<compile_context>
chip_gen: v5e
topology: v5e:2x2
jax: 0.10.0
libtpu: 0.0.40
codegen_flags: <defaults>
</compile_context>

<pallas_src>
import functools
import math

import jax
import jax.numpy as jnp
from jax.experimental import pallas as pl
from jax.experimental.pallas import tpu as pltpu

# bk is intentionally excluded (softmax-invariant, see header).
STACKED_ORDER = ["wq", "bq", "wk", "wv", "bv", "wo", "bo",
                 "g1", "be1", "w1", "b1", "w2", "b2", "g2", "be2"]


# --------------------------------------------------------------------------
# Fused encoder-stack kernel: one grid step = one (batch block, layer) pair.
# --------------------------------------------------------------------------
def _transformer_kernel(num_heads, dim_head, bt, lq, lk, eps, weights_resident,
                        x0_ref, k_ref, v_ref,
                        wq_ref, bq_ref, wk_ref, wv_ref, bv_ref,
                        wo_ref, bo_ref, g1_ref, be1_ref,
                        w1_ref, b1_ref, w2_ref, b2_ref, g2_ref, be2_ref,
                        o_ref, x_sc):
    l = pl.program_id(1)

    if weights_resident:
        # Whole (L, ...) stack resident in VMEM -> dynamic leading-axis index.
        def W(r):
            return r[l]
    else:
        # Per-layer streamed block (1, ...) -> static index.
        def W(r):
            return r[0]

    # Load the (concatenated) query sequence into the carried activation once.
    @pl.when(l == 0)
    def _():
        x_sc[...] = x0_ref[...].astype(jnp.float32)

    x = x_sc[...]                                    # (M, D) f32, M = bt*lq

    # bf16 MXU operands, f32 accumulation; elementwise math stays f32 (v5e-safe).
    xb = x.astype(jnp.bfloat16)
    kb = k_ref[...].astype(jnp.bfloat16)             # (Mk, D), Mk = bt*lk
    vb = v_ref[...].astype(jnp.bfloat16)

    inv_temp = 1.0 / math.sqrt(dim_head)

    # ---- fused full-width projections (one MXU matmul each) ----
    # bk dropped: a K bias shifts all scores of a query equally -> softmax-invariant.
    q = jnp.dot(xb, W(wq_ref), preferred_element_type=jnp.float32) + W(bq_ref)   # (M, H*dh)
    k = jnp.dot(kb, W(wk_ref), preferred_element_type=jnp.float32)               # (Mk, H*dh)
    v = jnp.dot(vb, W(wv_ref), preferred_element_type=jnp.float32) + W(bv_ref)   # (Mk, H*dh)

    # ---- per-head scaled dot-product attention (static unroll over H) ----
    head_outs = []
    for h in range(num_heads):
        sl = slice(h * dim_head, (h + 1) * dim_head)
        qh = q[:, sl].reshape(bt, lq, dim_head).astype(jnp.bfloat16)
        kh = k[:, sl].reshape(bt, lk, dim_head).astype(jnp.bfloat16)
        vh = v[:, sl].reshape(bt, lk, dim_head).astype(jnp.bfloat16)

        s = jnp.einsum("bqe,bke->bqk", qh, kh,
                       preferred_element_type=jnp.float32) * inv_temp
        s = s - jnp.max(s, axis=-1, keepdims=True)
        p = jnp.exp(s)
        p = p / jnp.sum(p, axis=-1, keepdims=True)    # exact normalization

        oh = jnp.einsum("bqk,bke->bqe", p.astype(jnp.bfloat16), vh,
                        preferred_element_type=jnp.float32)
        head_outs.append(oh.reshape(bt * lq, dim_head))

    heads = head_outs[0] if num_heads == 1 else jnp.concatenate(head_outs, axis=-1)

    # single output projection: fc(concat_h oh) == (M, H*dh) @ (H*dh, D)
    attn_out = jnp.dot(heads.astype(jnp.bfloat16), W(wo_ref),
                       preferred_element_type=jnp.float32) + W(bo_ref)

    # ---- residual + LayerNorm 1 (f32) ----
    x1 = attn_out + x
    mu = jnp.mean(x1, axis=-1, keepdims=True)
    var = jnp.mean((x1 - mu) ** 2, axis=-1, keepdims=True)
    x1 = (x1 - mu) * jax.lax.rsqrt(var + eps) * W(g1_ref) + W(be1_ref)

    # ---- position-wise FFN (Conv1d k=1 == Linear over features) ----
    h1 = jnp.dot(x1.astype(jnp.bfloat16), W(w1_ref),
                 preferred_element_type=jnp.float32) + W(b1_ref)
    h1 = jnp.maximum(h1, 0.0)
    h2 = jnp.dot(h1.astype(jnp.bfloat16), W(w2_ref),
                 preferred_element_type=jnp.float32) + W(b2_ref)

    # ---- residual + LayerNorm 2 (f32) ----
    y = h2 + x1
    mu = jnp.mean(y, axis=-1, keepdims=True)
    var = jnp.mean((y - mu) ** 2, axis=-1, keepdims=True)
    y = (y - mu) * jax.lax.rsqrt(var + eps) * W(g2_ref) + W(be2_ref)

    x_sc[...] = y                                     # carry activation to next layer

    @pl.when(l == pl.num_programs(1) - 1)
    def _():
        o_ref[...] = y.astype(o_ref.dtype)            # single final store


# --------------------------------------------------------------------------
# Parameter stacking (wrapper-side, traced by XLA, not the kernel)
# --------------------------------------------------------------------------
def stack_layer_params(layer_params):
    bf = jnp.bfloat16

    def st(name):
        return jnp.stack([p[name] for p in layer_params], axis=0)

    # Weights un-split (full (D, H*dh) / (H*dh, D)) so the kernel does fused
    # full-width projections; MXU operands stored bf16 to halve weight DMA.
    return {
        "wq": st("wq").astype(bf), "bq": st("bq"),
        "wk": st("wk").astype(bf),
        "wv": st("wv").astype(bf), "bv": st("bv"),
        "wo": st("wo").astype(bf), "bo": st("bo"),
        "g1": st("g1"), "be1": st("be1"),
        "w1": st("w1").astype(bf), "b1": st("b1"),
        "w2": st("w2").astype(bf), "b2": st("b2"),
        "g2": st("g2"), "be2": st("be2"),
    }


def _default_batch_block(B):
    """v7x has 2 TensorCores/chip: give the 'parallel' batch axis >= 2 blocks.
    v5e/v6e have a single TC: one big block = max matmul M, min grid overhead."""
    try:
        kind = jax.devices()[0].device_kind.lower()
    except Exception:
        kind = ""
    if "v7" in kind and B >= 2 and B % 2 == 0:
        return B // 2
    return B


def transformer_forward(cell_line_emb, src_q_seq, src_k_seq, src_v_seq,
                        layer_params, *, num_heads, dim_head,
                        batch_block=None, eps=1e-5):
    # torch.cat((cell_line_emb, src_q_seq), dim=1); dropout(p=0.0) == identity
    x0 = jnp.concatenate([cell_line_emb, src_q_seq], axis=1)       # (B, Lq, D)
    B, Lq, D = x0.shape
    Lk = src_k_seq.shape[1]
    L = len(layer_params)
    hdh = num_heads * dim_head
    dim_hid = layer_params[0]["w1"].shape[1]

    Bt = _default_batch_block(B) if batch_block is None else batch_block
    assert B % Bt == 0, "batch_block must divide batch"
    nb = B // Bt
    M, Mk = Bt * Lq, Bt * Lk

    stacked = stack_layer_params(layer_params)

    # ---- VMEM budgeting (v7x: 64 MiB physical; keep well under ~48 MiB) ----
    weight_bytes = sum(a.size * jnp.dtype(a.dtype).itemsize for a in stacked.values())
    per_layer_w = weight_bytes // L
    act_bytes = 4 * (M * D                       # x_sc carried activation
                     + 2 * (M * D + 2 * Mk * D)  # double-buffered x0/k/v blocks
                     + 2 * M * D)                # double-buffered output block
    tmp_bytes = 4 * (M * (2 * hdh + dim_hid) + 2 * Mk * hdh)   # in-kernel temporaries
    resident_footprint = act_bytes + tmp_bytes + 2 * weight_bytes
    weights_resident = resident_footprint <= (40 << 20)
    footprint = resident_footprint if weights_resident else (act_bytes + tmp_bytes
                                                             + 2 * per_layer_w)
    vmem_limit = int(min(max(footprint + (8 << 20), 32 << 20), 48 << 20))

    x0_flat = x0.reshape(B * Lq, D)
    k_flat = src_k_seq.reshape(B * Lk, D)
    v_flat = src_v_seq.reshape(B * Lk, D)

    kernel = functools.partial(_transformer_kernel, num_heads, dim_head,
                               Bt, Lq, Lk, eps, weights_resident)

    def weight_spec(arr):
        if weights_resident:
            zeros = (0,) * arr.ndim
            return pl.BlockSpec(arr.shape, lambda b, l, _z=zeros: _z)   # DMA'd once
        block = (1,) + arr.shape[1:]
        zeros = (0,) * (arr.ndim - 1)
        return pl.BlockSpec(block, lambda b, l, _z=zeros: (l,) + _z)    # per-layer stream

    in_specs = [
        pl.BlockSpec((M, D), lambda b, l: (b, 0)),    # x0: const over layer axis
        pl.BlockSpec((Mk, D), lambda b, l: (b, 0)),   # k : const over layer axis
        pl.BlockSpec((Mk, D), lambda b, l: (b, 0)),   # v : const over layer axis
    ] + [weight_spec(stacked[name]) for name in STACKED_ORDER]

    out = pl.pallas_call(
        kernel,
        out_shape=jax.ShapeDtypeStruct((B * Lq, D), x0.dtype),
        grid=(nb, L),                                 # (parallel batch blocks, layers)
        in_specs=in_specs,
        out_specs=pl.BlockSpec((M, D), lambda b, l: (b, 0)),
        scratch_shapes=[pltpu.VMEM((M, D), jnp.float32)],   # activation across layers
        compiler_params=pltpu.CompilerParams(
            dimension_semantics=("parallel", "arbitrary"),
            vmem_limit_bytes=vmem_limit),
    )(x0_flat, k_flat, v_flat, *[stacked[name] for name in STACKED_ORDER])

    # enc_output[:, 1:]
    return out.reshape(B, Lq, D)[:, 1:]


# ---------------- pure-JAX references (correctness check only) ----------------
def _ref_layer(x, kseq, vseq, p, num_heads, dim_head, exact_f32):
    B, Lq, D = x.shape
    Lk = kseq.shape[1]
    dh = dim_head
    dt = jnp.float32 if exact_f32 else jnp.bfloat16
    x2 = x.reshape(B * Lq, D)
    xb = x2.astype(dt)
    kb = kseq.reshape(B * Lk, D).astype(dt)
    vb = vseq.reshape(B * Lk, D).astype(dt)

    q = jnp.dot(xb, p["wq"].astype(dt), preferred_element_type=jnp.float32) + p["bq"]
    k = jnp.dot(kb, p["wk"].astype(dt), preferred_element_type=jnp.float32)
    if exact_f32:
        k = k + p["bk"]     # kernel drops bk (mathematically softmax-invariant)
    v = jnp.dot(vb, p["wv"].astype(dt), preferred_element_type=jnp.float32) + p["bv"]

    heads = []
    for h in range(num_heads):
        sl = slice(h * dh, (h + 1) * dh)
        qh = q[:, sl].reshape(B, Lq, dh).astype(dt)
        kh = k[:, sl].reshape(B, Lk, dh).astype(dt)
        vh = v[:, sl].reshape(B, Lk, dh).astype(dt)
        s = jnp.einsum("bqe,bke->bqk", qh, kh,
                       preferred_element_type=jnp.float32) / math.sqrt(dh)
        a = jax.nn.softmax(s, axis=-1)
        oh = jnp.einsum("bqk,bke->bqe", a.astype(dt), vh,
                        preferred_element_type=jnp.float32)
        heads.append(oh.reshape(B * Lq, dh))
    cat = heads[0] if num_heads == 1 else jnp.concatenate(heads, axis=-1)
    attn = jnp.dot(cat.astype(dt), p["wo"].astype(dt),
                   preferred_element_type=jnp.float32) + p["bo"]

    x1 = attn + x2
    mu = x1.mean(-1, keepdims=True)
    var = ((x1 - mu) ** 2).mean(-1, keepdims=True)
    x1 = (x1 - mu) * jax.lax.rsqrt(var + 1e-5) * p["g1"] + p["be1"]

    h1 = jnp.maximum(jnp.dot(x1.astype(dt), p["w1"].astype(dt),
                             preferred_element_type=jnp.float32) + p["b1"], 0.0)
    h2 = jnp.dot(h1.astype(dt), p["w2"].astype(dt),
                 preferred_element_type=jnp.float32) + p["b2"]

    y = h2 + x1
    mu = y.mean(-1, keepdims=True)
    var = ((y - mu) ** 2).mean(-1, keepdims=True)
    y = (y - mu) * jax.lax.rsqrt(var + 1e-5) * p["g2"] + p["be2"]
    return y.reshape(B, Lq, D)


def _ref_forward(cell, q, k, v, layer_params, num_heads, dim_head, exact_f32):
    x = jnp.concatenate([cell, q], axis=1)
    for p in layer_params:
        x = _ref_layer(x, k, v, p, num_heads, dim_head, exact_f32)
    return x[:, 1:]


# ---------------- deterministic parameter init ----------------
def _xavier(key, shape):
    fan_in, fan_out = shape
    bound = math.sqrt(6.0 / (fan_in + fan_out))
    return jax.random.uniform(key, shape, jnp.float32, -bound, bound)


def init_layer_params(key, dim_input, dim_hid, num_heads, dim_head):
    ks = jax.random.split(key, 6)
    dh = num_heads * dim_head
    return {
        "wq": _xavier(ks[0], (dim_input, dh)), "bq": jnp.zeros((1, dh), jnp.float32),
        "wk": _xavier(ks[1], (dim_input, dh)), "bk": jnp.zeros((1, dh), jnp.float32),
        "wv": _xavier(ks[2], (dim_input, dh)), "bv": jnp.zeros((1, dh), jnp.float32),
        "wo": _xavier(ks[3], (dh, dim_input)), "bo": jnp.zeros((1, dim_input), jnp.float32),
        "g1": jnp.ones((1, dim_input), jnp.float32), "be1": jnp.zeros((1, dim_input), jnp.float32),
        "w1": _xavier(ks[4], (dim_input, dim_hid)), "b1": jnp.zeros((1, dim_hid), jnp.float32),
        "w2": _xavier(ks[5], (dim_hid, dim_input)), "b2": jnp.zeros((1, dim_input), jnp.float32),
        "g2": jnp.ones((1, dim_input), jnp.float32), "be2": jnp.zeros((1, dim_input), jnp.float32),
    }


if __name__ == "__main__":
    B = 2
    dim_input = 32     # d_model
    dim_hid = 64       # FFN hidden
    num_layers = 2
    num_heads = 2
    dim_head = 16
    seq_q = 7          # -> Lq = 1 + 7 = 8 after concatenating cell_line_emb
    seq_kv = 8

    root = jax.random.PRNGKey(0)
    k_in, k_par = jax.random.split(root)
    k1, k2, k3, k4 = jax.random.split(k_in, 4)
    cell_line_emb = jax.random.normal(k1, (B, 1, dim_input), jnp.float32)
    src_q_seq = jax.random.normal(k2, (B, seq_q, dim_input), jnp.float32)
    src_k_seq = jax.random.normal(k3, (B, seq_kv, dim_input), jnp.float32)
    src_v_seq = jax.random.normal(k4, (B, seq_kv, dim_input), jnp.float32)

    layer_keys = jax.random.split(k_par, num_layers)
    layer_params = [init_layer_params(k, dim_input, dim_hid, num_heads, dim_head)
                    for k in layer_keys]

    out = transformer_forward(cell_line_emb, src_q_seq, src_k_seq, src_v_seq,
                              layer_params, num_heads=num_heads, dim_head=dim_head)
    out = jax.block_until_ready(out)
    assert out.shape == (B, seq_q, dim_input), out.shape

    # Numerics-matched reference (bf16 MXU operands, f32 accumulation, bk dropped).
    ref_bf16 = _ref_forward(cell_line_emb, src_q_seq, src_k_seq, src_v_seq,
                            layer_params, num_heads, dim_head, exact_f32=False)
    # Exact f32 reference (original module semantics, bk included); loose tolerance
    # only covers the deliberate bf16-operand MXU precision choice.
    ref_f32 = _ref_forward(cell_line_emb, src_q_seq, src_k_seq, src_v_seq,
                           layer_params, num_heads, dim_head, exact_f32=True)

    err_matched = float(jnp.max(jnp.abs(out - ref_bf16)))
    err_exact = float(jnp.max(jnp.abs(out - ref_f32)))
    assert jnp.allclose(out, ref_bf16, atol=1e-2, rtol=1e-2), err_matched
    assert jnp.allclose(out, ref_f32, atol=1e-1, rtol=1e-1), err_exact

    print("KERNEL_OK")
</pallas_src>

<mosaic_0001>
module attributes {stable_mosaic.version = 11 : i64} {
  func.func @_transformer_kernel(%arg0: i32, %arg1: i32, %arg2: memref<16x32xf32, #tpu.memory_space<vmem>>, %arg3: memref<16x32xf32, #tpu.memory_space<vmem>>, %arg4: memref<16x32xf32, #tpu.memory_space<vmem>>, %arg5: memref<2x32x32xbf16, #tpu.memory_space<vmem>>, %arg6: memref<2x1x32xf32, #tpu.memory_space<vmem>>, %arg7: memref<2x32x32xbf16, #tpu.memory_space<vmem>>, %arg8: memref<2x32x32xbf16, #tpu.memory_space<vmem>>, %arg9: memref<2x1x32xf32, #tpu.memory_space<vmem>>, %arg10: memref<2x32x32xbf16, #tpu.memory_space<vmem>>, %arg11: memref<2x1x32xf32, #tpu.memory_space<vmem>>, %arg12: memref<2x1x32xf32, #tpu.memory_space<vmem>>, %arg13: memref<2x1x32xf32, #tpu.memory_space<vmem>>, %arg14: memref<2x32x64xbf16, #tpu.memory_space<vmem>>, %arg15: memref<2x1x64xf32, #tpu.memory_space<vmem>>, %arg16: memref<2x64x32xbf16, #tpu.memory_space<vmem>>, %arg17: memref<2x1x32xf32, #tpu.memory_space<vmem>>, %arg18: memref<2x1x32xf32, #tpu.memory_space<vmem>>, %arg19: memref<2x1x32xf32, #tpu.memory_space<vmem>>, %arg20: memref<16x32xf32, #tpu.memory_space<vmem>>, %arg21: memref<16x32xf32, #tpu.memory_space<vmem>>) attributes {dimension_semantics = [#tpu.dimension_semantics<parallel>, #tpu.dimension_semantics<arbitrary>], iteration_bounds = array<i64: 1, 2>, scalar_prefetch = 0 : i64, scratch_operands = 1 : i64, tpu.core_type = #tpu.core_type<tc>, window_params = [{transform_indices = @transform_0, window_bounds = array<i64: 16, 32>}, {transform_indices = @transform_1, window_bounds = array<i64: 16, 32>}, {transform_indices = @transform_2, window_bounds = array<i64: 16, 32>}, {pipeline_mode = #tpu.pipeline_mode<synchronous>, transform_indices = @transform_3, window_bounds = array<i64: 2, 32, 32>}, {pipeline_mode = #tpu.pipeline_mode<synchronous>, transform_indices = @transform_4, window_bounds = array<i64: 2, 1, 32>}, {pipeline_mode = #tpu.pipeline_mode<synchronous>, transform_indices = @transform_5, window_bounds = array<i64: 2, 32, 32>}, {pipeline_mode = #tpu.pipeline_mode<synchronous>, transform_indices = @transform_6, window_bounds = array<i64: 2, 32, 32>}, {pipeline_mode = #tpu.pipeline_mode<synchronous>, transform_indices = @transform_7, window_bounds = array<i64: 2, 1, 32>}, {pipeline_mode = #tpu.pipeline_mode<synchronous>, transform_indices = @transform_8, window_bounds = array<i64: 2, 32, 32>}, {pipeline_mode = #tpu.pipeline_mode<synchronous>, transform_indices = @transform_9, window_bounds = array<i64: 2, 1, 32>}, {pipeline_mode = #tpu.pipeline_mode<synchronous>, transform_indices = @transform_10, window_bounds = array<i64: 2, 1, 32>}, {pipeline_mode = #tpu.pipeline_mode<synchronous>, transform_indices = @transform_11, window_bounds = array<i64: 2, 1, 32>}, {pipeline_mode = #tpu.pipeline_mode<synchronous>, transform_indices = @transform_12, window_bounds = array<i64: 2, 32, 64>}, {pipeline_mode = #tpu.pipeline_mode<synchronous>, transform_indices = @transform_13, window_bounds = array<i64: 2, 1, 64>}, {pipeline_mode = #tpu.pipeline_mode<synchronous>, transform_indices = @transform_14, window_bounds = array<i64: 2, 64, 32>}, {pipeline_mode = #tpu.pipeline_mode<synchronous>, transform_indices = @transform_15, window_bounds = array<i64: 2, 1, 32>}, {pipeline_mode = #tpu.pipeline_mode<synchronous>, transform_indices = @transform_16, window_bounds = array<i64: 2, 1, 32>}, {pipeline_mode = #tpu.pipeline_mode<synchronous>, transform_indices = @transform_17, window_bounds = array<i64: 2, 1, 32>}, {transform_indices = @transform_18, window_bounds = array<i64: 16, 32>}]} {
    %c0_i32 = arith.constant 0 : i32
    %0 = arith.cmpi eq, %arg1, %c0_i32 : i32
    %1 = arith.extui %0 : i1 to i32
    %c0_i32_0 = arith.constant 0 : i32
    %2 = arith.cmpi ne, %1, %c0_i32_0 : i32
    scf.if %2 {
      %c0_65 = arith.constant 0 : index
      %c0_66 = arith.constant 0 : index
      %174 = vector.load %arg2[%c0_65, %c0_66] : memref<16x32xf32, #tpu.memory_space<vmem>>, vector<16x32xf32>
      %c0_67 = arith.constant 0 : index
      %c0_68 = arith.constant 0 : index
      %175 = vector.load %arg21[%c0_67, %c0_68] : memref<16x32xf32, #tpu.memory_space<vmem>>, vector<16x32xf32>
      tpu.vector_store %arg21[%c0_67, %c0_68], %174 {strides = array<i32>} : memref<16x32xf32, #tpu.memory_space<vmem>>, vector<16x32xf32>,
    } else {
    }
    %c0 = arith.constant 0 : index
    %c0_1 = arith.constant 0 : index
    %3 = vector.load %arg21[%c0, %c0_1] : memref<16x32xf32, #tpu.memory_space<vmem>>, vector<16x32xf32>
    %4 = arith.truncf %3 : vector<16x32xf32> to vector<16x32xbf16>
    %c0_2 = arith.constant 0 : index
    %c0_3 = arith.constant 0 : index
    %5 = vector.load %arg3[%c0_2, %c0_3] : memref<16x32xf32, #tpu.memory_space<vmem>>, vector<16x32xf32>
    %6 = arith.truncf %5 : vector<16x32xf32> to vector<16x32xbf16>
    %c0_4 = arith.constant 0 : index
    %c0_5 = arith.constant 0 : index
    %7 = vector.load %arg4[%c0_4, %c0_5] : memref<16x32xf32, #tpu.memory_space<vmem>>, vector<16x32xf32>
    %8 = arith.truncf %7 : vector<16x32xf32> to vector<16x32xbf16>
    %9 = arith.index_cast %arg1 : i32 to index
    %c0_6 = arith.constant 0 : index
    %c0_7 = arith.constant 0 : index
    %10 = vector.load %arg5[%9, %c0_6, %c0_7] : memref<2x32x32xbf16, #tpu.memory_space<vmem>>, vector<1x32x32xbf16>
    %11 = vector.shape_cast %10 : vector<1x32x32xbf16> to vector<32x32xbf16>
    %cst = arith.constant dense<0.000000e+00> : vector<16x32xf32>
    %12 = tpu.matmul %4, %11, %cst {dimension_numbers = #tpu.dot_dimension_numbers<[1], [0], [0], [1], [0, 0, 1, 1], [], []>} : vector<16x32xbf16>, vector<32x32xbf16>, vector<16x32xf32> -> vector<16x32xf32>
    %13 = arith.index_cast %arg1 : i32 to index
    %c0_8 = arith.constant 0 : index
    %c0_9 = arith.constant 0 : index
    %14 = vector.load %arg6[%13, %c0_8, %c0_9] : memref<2x1x32xf32, #tpu.memory_space<vmem>>, vector<1x1x32xf32>
    %15 = vector.shape_cast %14 : vector<1x1x32xf32> to vector<1x32xf32>
    %16 = vector.broadcast %15 : vector<1x32xf32> to vector<16x32xf32>
    %17 = arith.addf %12, %16 : vector<16x32xf32>
    %18 = arith.index_cast %arg1 : i32 to index
    %c0_10 = arith.constant 0 : index
    %c0_11 = arith.constant 0 : index
    %19 = vector.load %arg7[%18, %c0_10, %c0_11] : memref<2x32x32xbf16, #tpu.memory_space<vmem>>, vector<1x32x32xbf16>
    %20 = vector.shape_cast %19 : vector<1x32x32xbf16> to vector<32x32xbf16>
    %cst_12 = arith.constant dense<0.000000e+00> : vector<16x32xf32>
    %21 = tpu.matmul %6, %20, %cst_12 {dimension_numbers = #tpu.dot_dimension_numbers<[1], [0], [0], [1], [0, 0, 1, 1], [], []>} : vector<16x32xbf16>, vector<32x32xbf16>, vector<16x32xf32> -> vector<16x32xf32>
    %22 = arith.index_cast %arg1 : i32 to index
    %c0_13 = arith.constant 0 : index
    %c0_14 = arith.constant 0 : index
    %23 = vector.load %arg8[%22, %c0_13, %c0_14] : memref<2x32x32xbf16, #tpu.memory_space<vmem>>, vector<1x32x32xbf16>
    %24 = vector.shape_cast %23 : vector<1x32x32xbf16> to vector<32x32xbf16>
    %cst_15 = arith.constant dense<0.000000e+00> : vector<16x32xf32>
    %25 = tpu.matmul %8, %24, %cst_15 {dimension_numbers = #tpu.dot_dimension_numbers<[1], [0], [0], [1], [0, 0, 1, 1], [], []>} : vector<16x32xbf16>, vector<32x32xbf16>, vector<16x32xf32> -> vector<16x32xf32>
    %26 = arith.index_cast %arg1 : i32 to index
    %c0_16 = arith.constant 0 : index
    %c0_17 = arith.constant 0 : index
    %27 = vector.load %arg9[%26, %c0_16, %c0_17] : memref<2x1x32xf32, #tpu.memory_space<vmem>>, vector<1x1x32xf32>
    %28 = vector.shape_cast %27 : vector<1x1x32xf32> to vector<1x32xf32>
    %29 = vector.broadcast %28 : vector<1x32xf32> to vector<16x32xf32>
    %30 = arith.addf %25, %29 : vector<16x32xf32>
    %31 = vector.extract_strided_slice %17 {offsets = [0, 0], sizes = [16, 16], strides = [1, 1]} : vector<16x32xf32> to vector<16x16xf32>
    %32 = vector.shape_cast %31 : vector<16x16xf32> to vector<2x8x16xf32>
    %33 = arith.truncf %32 : vector<2x8x16xf32> to vector<2x8x16xbf16>
    %34 = vector.extract_strided_slice %21 {offsets = [0, 0], sizes = [16, 16], strides = [1, 1]} : vector<16x32xf32> to vector<16x16xf32>
    %35 = vector.shape_cast %34 : vector<16x16xf32> to vector<2x8x16xf32>
    %36 = arith.truncf %35 : vector<2x8x16xf32> to vector<2x8x16xbf16>
    %37 = vector.extract_strided_slice %30 {offsets = [0, 0], sizes = [16, 16], strides = [1, 1]} : vector<16x32xf32> to vector<16x16xf32>
    %38 = vector.shape_cast %37 : vector<16x16xf32> to vector<2x8x16xf32>
    %39 = arith.truncf %38 : vector<2x8x16xf32> to vector<2x8x16xbf16>
    "tpu.trace_start"() <{level = 10 : i32, message = "bqe,bke->bqk"}> : () -> ()
    %cst_18 = arith.constant dense<0.000000e+00> : vector<2x8x8xf32>
    %40 = tpu.matmul %33, %36, %cst_18 {dimension_numbers = #tpu.dot_dimension_numbers<[2], [2], [1], [1], [0, 0, 0, 1, 1, 1], [0], [0]>} : vector<2x8x16xbf16>, vector<2x8x16xbf16>, vector<2x8x8xf32> -> vector<2x8x8xf32>
    "tpu.trace_stop"() : () -> ()
    %cst_19 = arith.constant 2.500000e-01 : f32
    %41 = vector.broadcast %cst_19 : f32 to vector<2x8x8xf32>
    %42 = arith.mulf %40, %41 : vector<2x8x8xf32>
    %cst_20 = arith.constant dense<0xFF800000> : vector<2x8xf32>
    %43 = vector.multi_reduction <maximumf>, %42, %cst_20 [2] : vector<2x8x8xf32> to vector<2x8xf32>
    %44 = vector.shape_cast %43 : vector<2x8xf32> to vector<2x8x1xf32>
    %45 = vector.broadcast %44 : vector<2x8x1xf32> to vector<2x8x8xf32>
    %46 = arith.subf %42, %45 : vector<2x8x8xf32>
    %47 = math.exp %46 : vector<2x8x8xf32>
    %cst_21 = arith.constant dense<0.000000e+00> : vector<2x8xf32>
    %48 = vector.multi_reduction <add>, %47, %cst_21 [2] : vector<2x8x8xf32> to vector<2x8xf32>
    %49 = vector.shape_cast %48 : vector<2x8xf32> to vector<2x8x1xf32>
    %50 = vector.broadcast %49 : vector<2x8x1xf32> to vector<2x8x8xf32>
    %51 = arith.divf %47, %50 : vector<2x8x8xf32>
    %52 = arith.truncf %51 : vector<2x8x8xf32> to vector<2x8x8xbf16>
    "tpu.trace_start"() <{level = 10 : i32, message = "bqk,bke->bqe"}> : () -> ()
    %cst_22 = arith.constant dense<0.000000e+00> : vector<2x8x16xf32>
    %53 = tpu.matmul %52, %39, %cst_22 {dimension_numbers = #tpu.dot_dimension_numbers<[2], [1], [1], [2], [0, 0, 0, 1, 1, 2], [0], [0]>} : vector<2x8x8xbf16>, vector<2x8x16xbf16>, vector<2x8x16xf32> -> vector<2x8x16xf32>
    "tpu.trace_stop"() : () -> ()
    %54 = vector.shape_cast %53 : vector<2x8x16xf32> to vector<16x16xf32>
    %55 = vector.extract_strided_slice %17 {offsets = [0, 16], sizes = [16, 16], strides = [1, 1]} : vector<16x32xf32> to vector<16x16xf32>
    %56 = vector.shape_cast %55 : vector<16x16xf32> to vector<2x8x16xf32>
    %57 = arith.truncf %56 : vector<2x8x16xf32> to vector<2x8x16xbf16>
    %58 = vector.extract_strided_slice %21 {offsets = [0, 16], sizes = [16, 16], strides = [1, 1]} : vector<16x32xf32> to vector<16x16xf32>
    %59 = vector.shape_cast %58 : vector<16x16xf32> to vector<2x8x16xf32>
    %60 = arith.truncf %59 : vector<2x8x16xf32> to vector<2x8x16xbf16>
    %61 = vector.extract_strided_slice %30 {offsets = [0, 16], sizes = [16, 16], strides = [1, 1]} : vector<16x32xf32> to vector<16x16xf32>
    %62 = vector.shape_cast %61 : vector<16x16xf32> to vector<2x8x16xf32>
    %63 = arith.truncf %62 : vector<2x8x16xf32> to vector<2x8x16xbf16>
    "tpu.trace_start"() <{level = 10 : i32, message = "bqe,bke->bqk"}> : () -> ()
    %cst_23 = arith.constant dense<0.000000e+00> : vector<2x8x8xf32>
    %64 = tpu.matmul %57, %60, %cst_23 {dimension_numbers = #tpu.dot_dimension_numbers<[2], [2], [1], [1], [0, 0, 0, 1, 1, 1], [0], [0]>} : vector<2x8x16xbf16>, vector<2x8x16xbf16>, vector<2x8x8xf32> -> vector<2x8x8xf32>
    "tpu.trace_stop"() : () -> ()
    %cst_24 = arith.constant 2.500000e-01 : f32
    %65 = vector.broadcast %cst_24 : f32 to vector<2x8x8xf32>
    %66 = arith.mulf %64, %65 : vector<2x8x8xf32>
    %cst_25 = arith.constant dense<0xFF800000> : vector<2x8xf32>
    %67 = vector.multi_reduction <maximumf>, %66, %cst_25 [2] : vector<2x8x8xf32> to vector<2x8xf32>
    %68 = vector.shape_cast %67 : vector<2x8xf32> to vector<2x8x1xf32>
    %69 = vector.broadcast %68 : vector<2x8x1xf32> to vector<2x8x8xf32>
    %70 = arith.subf %66, %69 : vector<2x8x8xf32>
    %71 = math.exp %70 : vector<2x8x8xf32>
    %cst_26 = arith.constant dense<0.000000e+00> : vector<2x8xf32>
    %72 = vector.multi_reduction <add>, %71, %cst_26 [2] : vector<2x8x8xf32> to vector<2x8xf32>
    %73 = vector.shape_cast %72 : vector<2x8xf32> to vector<2x8x1xf32>
    %74 = vector.broadcast %73 : vector<2x8x1xf32> to vector<2x8x8xf32>
    %75 = arith.divf %71, %74 : vector<2x8x8xf32>
    %76 = arith.truncf %75 : vector<2x8x8xf32> to vector<2x8x8xbf16>
    "tpu.trace_start"() <{level = 10 : i32, message = "bqk,bke->bqe"}> : () -> ()
    %cst_27 = arith.constant dense<0.000000e+00> : vector<2x8x16xf32>
    %77 = tpu.matmul %76, %63, %cst_27 {dimension_numbers = #tpu.dot_dimension_numbers<[2], [1], [1], [2], [0, 0, 0, 1, 1, 2], [0], [0]>} : vector<2x8x8xbf16>, vector<2x8x16xbf16>, vector<2x8x16xf32> -> vector<2x8x16xf32>
    "tpu.trace_stop"() : () -> ()
    %78 = vector.shape_cast %77 : vector<2x8x16xf32> to vector<16x16xf32>
    %79 = tpu.concatenate %54, %78 in 1 : vector<16x16xf32>, vector<16x16xf32> -> vector<16x32xf32>
    %80 = arith.truncf %79 : vector<16x32xf32> to vector<16x32xbf16>
    %81 = arith.index_cast %arg1 : i32 to index
    %c0_28 = arith.constant 0 : index
    %c0_29 = arith.constant 0 : index
    %82 = vector.load %arg10[%81, %c0_28, %c0_29] : memref<2x32x32xbf16, #tpu.memory_space<vmem>>, vector<1x32x32xbf16>
    %83 = vector.shape_cast %82 : vector<1x32x32xbf16> to vector<32x32xbf16>
    %cst_30 = arith.constant dense<0.000000e+00> : vector<16x32xf32>
    %84 = tpu.matmul %80, %83, %cst_30 {dimension_numbers = #tpu.dot_dimension_numbers<[1], [0], [0], [1], [0, 0, 1, 1], [], []>} : vector<16x32xbf16>, vector<32x32xbf16>, vector<16x32xf32> -> vector<16x32xf32>
    %85 = arith.index_cast %arg1 : i32 to index
    %c0_31 = arith.constant 0 : index
    %c0_32 = arith.constant 0 : index
    %86 = vector.load %arg11[%85, %c0_31, %c0_32] : memref<2x1x32xf32, #tpu.memory_space<vmem>>, vector<1x1x32xf32>
    %87 = vector.shape_cast %86 : vector<1x1x32xf32> to vector<1x32xf32>
    %88 = vector.broadcast %87 : vector<1x32xf32> to vector<16x32xf32>
    %89 = arith.addf %84, %88 : vector<16x32xf32>
    %90 = arith.addf %89, %3 : vector<16x32xf32>
    %cst_33 = arith.constant dense<0.000000e+00> : vector<16xf32>
    %91 = vector.multi_reduction <add>, %90, %cst_33 [1] : vector<16x32xf32> to vector<16xf32>
    %92 = vector.shape_cast %91 : vector<16xf32> to vector<16x1xf32>
    %cst_34 = arith.constant 3.200000e+01 : f32
    %93 = vector.broadcast %cst_34 : f32 to vector<16x1xf32>
    %94 = arith.divf %92, %93 : vector<16x1xf32>
    %95 = vector.broadcast %94 : vector<16x1xf32> to vector<16x32xf32>
    %96 = arith.subf %90, %95 : vector<16x32xf32>
    %97 = arith.mulf %96, %96 : vector<16x32xf32>
    %cst_35 = arith.constant dense<0.000000e+00> : vector<16xf32>
    %98 = vector.multi_reduction <add>, %97, %cst_35 [1] : vector<16x32xf32> to vector<16xf32>
    %99 = vector.shape_cast %98 : vector<16xf32> to vector<16x1xf32>
    %cst_36 = arith.constant 3.200000e+01 : f32
    %100 = vector.broadcast %cst_36 : f32 to vector<16x1xf32>
    %101 = arith.divf %99, %100 : vector<16x1xf32>
    %102 = vector.broadcast %94 : vector<16x1xf32> to vector<16x32xf32>
    %103 = arith.subf %90, %102 : vector<16x32xf32>
    %cst_37 = arith.constant 9.99999974E-6 : f32
    %104 = vector.broadcast %cst_37 : f32 to vector<16x1xf32>
    %105 = arith.addf %101, %104 : vector<16x1xf32>
    %106 = math.rsqrt %105 : vector<16x1xf32>
    %107 = vector.broadcast %106 : vector<16x1xf32> to vector<16x32xf32>
    %108 = arith.mulf %103, %107 : vector<16x32xf32>
    %109 = arith.index_cast %arg1 : i32 to index
    %c0_38 = arith.constant 0 : index
    %c0_39 = arith.constant 0 : index
    %110 = vector.load %arg12[%109, %c0_38, %c0_39] : memref<2x1x32xf32, #tpu.memory_space<vmem>>, vector<1x1x32xf32>
    %111 = vector.shape_cast %110 : vector<1x1x32xf32> to vector<1x32xf32>
    %112 = vector.broadcast %111 : vector<1x32xf32> to vector<16x32xf32>
    %113 = arith.mulf %108, %112 : vector<16x32xf32>
    %114 = arith.index_cast %arg1 : i32 to index
    %c0_40 = arith.constant 0 : index
    %c0_41 = arith.constant 0 : index
    %115 = vector.load %arg13[%114, %c0_40, %c0_41] : memref<2x1x32xf32, #tpu.memory_space<vmem>>, vector<1x1x32xf32>
    %116 = vector.shape_cast %115 : vector<1x1x32xf32> to vector<1x32xf32>
    %117 = vector.broadcast %116 : vector<1x32xf32> to vector<16x32xf32>
    %118 = arith.addf %113, %117 : vector<16x32xf32>
    %119 = arith.truncf %118 : vector<16x32xf32> to vector<16x32xbf16>
    %120 = arith.index_cast %arg1 : i32 to index
    %c0_42 = arith.constant 0 : index
    %c0_43 = arith.constant 0 : index
    %121 = vector.load %arg14[%120, %c0_42, %c0_43] : memref<2x32x64xbf16, #tpu.memory_space<vmem>>, vector<1x32x64xbf16>
    %122 = vector.shape_cast %121 : vector<1x32x64xbf16> to vector<32x64xbf16>
    %cst_44 = arith.constant dense<0.000000e+00> : vector<16x64xf32>
    %123 = tpu.matmul %119, %122, %cst_44 {dimension_numbers = #tpu.dot_dimension_numbers<[1], [0], [0], [1], [0, 0, 1, 1], [], []>} : vector<16x32xbf16>, vector<32x64xbf16>, vector<16x64xf32> -> vector<16x64xf32>
    %124 = arith.index_cast %arg1 : i32 to index
    %c0_45 = arith.constant 0 : index
    %c0_46 = arith.constant 0 : index
    %125 = vector.load %arg15[%124, %c0_45, %c0_46] : memref<2x1x64xf32, #tpu.memory_space<vmem>>, vector<1x1x64xf32>
    %126 = vector.shape_cast %125 : vector<1x1x64xf32> to vector<1x64xf32>
    %127 = vector.broadcast %126 : vector<1x64xf32> to vector<16x64xf32>
    %128 = arith.addf %123, %127 : vector<16x64xf32>
    %cst_47 = arith.constant 0.000000e+00 : f32
    %129 = vector.broadcast %cst_47 : f32 to vector<16x64xf32>
    %130 = arith.maximumf %128, %129 : vector<16x64xf32>
    %131 = arith.truncf %130 : vector<16x64xf32> to vector<16x64xbf16>
    %132 = arith.index_cast %arg1 : i32 to index
    %c0_48 = arith.constant 0 : index
    %c0_49 = arith.constant 0 : index
    %133 = vector.load %arg16[%132, %c0_48, %c0_49] : memref<2x64x32xbf16, #tpu.memory_space<vmem>>, vector<1x64x32xbf16>
    %134 = vector.shape_cast %133 : vector<1x64x32xbf16> to vector<64x32xbf16>
    %cst_50 = arith.constant dense<0.000000e+00> : vector<16x32xf32>
    %135 = tpu.matmul %131, %134, %cst_50 {dimension_numbers = #tpu.dot_dimension_numbers<[1], [0], [0], [1], [0, 0, 1, 1], [], []>} : vector<16x64xbf16>, vector<64x32xbf16>, vector<16x32xf32> -> vector<16x32xf32>
    %136 = arith.index_cast %arg1 : i32 to index
    %c0_51 = arith.constant 0 : index
    %c0_52 = arith.constant 0 : index
    %137 = vector.load %arg17[%136, %c0_51, %c0_52] : memref<2x1x32xf32, #tpu.memory_space<vmem>>, vector<1x1x32xf32>
    %138 = vector.shape_cast %137 : vector<1x1x32xf32> to vector<1x32xf32>
    %139 = vector.broadcast %138 : vector<1x32xf32> to vector<16x32xf32>
    %140 = arith.addf %135, %139 : vector<16x32xf32>
    %141 = arith.addf %140, %118 : vector<16x32xf32>
    %cst_53 = arith.constant dense<0.000000e+00> : vector<16xf32>
    %142 = vector.multi_reduction <add>, %141, %cst_53 [1] : vector<16x32xf32> to vector<16xf32>
    %143 = vector.shape_cast %142 : vector<16xf32> to vector<16x1xf32>
    %cst_54 = arith.constant 3.200000e+01 : f32
    %144 = vector.broadcast %cst_54 : f32 to vector<16x1xf32>
    %145 = arith.divf %143, %144 : vector<16x1xf32>
    %146 = vector.broadcast %145 : vector<16x1xf32> to vector<16x32xf32>
    %147 = arith.subf %141, %146 : vector<16x32xf32>
    %148 = arith.mulf %147, %147 : vector<16x32xf32>
    %cst_55 = arith.constant dense<0.000000e+00> : vector<16xf32>
    %149 = vector.multi_reduction <add>, %148, %cst_55 [1] : vector<16x32xf32> to vector<16xf32>
    %150 = vector.shape_cast %149 : vector<16xf32> to vector<16x1xf32>
    %cst_56 = arith.constant 3.200000e+01 : f32
    %151 = vector.broadcast %cst_56 : f32 to vector<16x1xf32>
    %152 = arith.divf %150, %151 : vector<16x1xf32>
    %153 = vector.broadcast %145 : vector<16x1xf32> to vector<16x32xf32>
    %154 = arith.subf %141, %153 : vector<16x32xf32>
    %cst_57 = arith.constant 9.99999974E-6 : f32
    %155 = vector.broadcast %cst_57 : f32 to vector<16x1xf32>
    %156 = arith.addf %152, %155 : vector<16x1xf32>
    %157 = math.rsqrt %156 : vector<16x1xf32>
    %158 = vector.broadcast %157 : vector<16x1xf32> to vector<16x32xf32>
    %159 = arith.mulf %154, %158 : vector<16x32xf32>
    %160 = arith.index_cast %arg1 : i32 to index
    %c0_58 = arith.constant 0 : index
    %c0_59 = arith.constant 0 : index
    %161 = vector.load %arg18[%160, %c0_58, %c0_59] : memref<2x1x32xf32, #tpu.memory_space<vmem>>, vector<1x1x32xf32>
    %162 = vector.shape_cast %161 : vector<1x1x32xf32> to vector<1x32xf32>
    %163 = vector.broadcast %162 : vector<1x32xf32> to vector<16x32xf32>
    %164 = arith.mulf %159, %163 : vector<16x32xf32>
    %165 = arith.index_cast %arg1 : i32 to index
    %c0_60 = arith.constant 0 : index
    %c0_61 = arith.constant 0 : index
    %166 = vector.load %arg19[%165, %c0_60, %c0_61] : memref<2x1x32xf32, #tpu.memory_space<vmem>>, vector<1x1x32xf32>
    %167 = vector.shape_cast %166 : vector<1x1x32xf32> to vector<1x32xf32>
    %168 = vector.broadcast %167 : vector<1x32xf32> to vector<16x32xf32>
    %169 = arith.addf %164, %168 : vector<16x32xf32>
    %c0_62 = arith.constant 0 : index
    %c0_63 = arith.constant 0 : index
    %170 = vector.load %arg21[%c0_62, %c0_63] : memref<16x32xf32, #tpu.memory_space<vmem>>, vector<16x32xf32>
    tpu.vector_store %arg21[%c0_62, %c0_63], %169 {strides = array<i32>} : memref<16x32xf32, #tpu.memory_space<vmem>>, vector<16x32xf32>,
    %c1_i32 = arith.constant 1 : i32
    %171 = arith.cmpi eq, %arg1, %c1_i32 : i32
    %172 = arith.extui %171 : i1 to i32
    %c0_i32_64 = arith.constant 0 : i32
    %173 = arith.cmpi ne, %172, %c0_i32_64 : i32
    scf.if %173 {
      %c0_65 = arith.constant 0 : index
      %c0_66 = arith.constant 0 : index
      %174 = vector.load %arg20[%c0_65, %c0_66] : memref<16x32xf32, #tpu.memory_space<vmem>>, vector<16x32xf32>
      tpu.vector_store %arg20[%c0_65, %c0_66], %169 {strides = array<i32>} : memref<16x32xf32, #tpu.memory_space<vmem>>, vector<16x32xf32>,
    } else {
    }
    return
  }
  func.func @transform_0(%arg0: i32, %arg1: i32) -> (i32, i32) {
    %c0_i32 = arith.constant 0 : i32
    %c0_i32_0 = arith.constant 0 : i32
    return %arg0, %c0_i32 : i32, i32
  }
  func.func @transform_1(%arg0: i32, %arg1: i32) -> (i32, i32) {
    %c0_i32 = arith.constant 0 : i32
    %c0_i32_0 = arith.constant 0 : i32
    return %arg0, %c0_i32 : i32, i32
  }
  func.func @transform_2(%arg0: i32, %arg1: i32) -> (i32, i32) {
    %c0_i32 = arith.constant 0 : i32
    %c0_i32_0 = arith.constant 0 : i32
    return %arg0, %c0_i32 : i32, i32
  }
  func.func @transform_3(%arg0: i32, %arg1: i32) -> (i32, i32, i32) {
    %c0_i32 = arith.constant 0 : i32
    %c0_i32_0 = arith.constant 0 : i32
    %c0_i32_1 = arith.constant 0 : i32
    %c0_i32_2 = arith.constant 0 : i32
    return %c0_i32, %c0_i32_0, %c0_i32_1 : i32, i32, i32
  }
  func.func @transform_4(%arg0: i32, %arg1: i32) -> (i32, i32, i32) {
    %c0_i32 = arith.constant 0 : i32
    %c0_i32_0 = arith.constant 0 : i32
    %c0_i32_1 = arith.constant 0 : i32
    %c0_i32_2 = arith.constant 0 : i32
    return %c0_i32, %c0_i32_0, %c0_i32_1 : i32, i32, i32
  }
  func.func @transform_5(%arg0: i32, %arg1: i32) -> (i32, i32, i32) {
    %c0_i32 = arith.constant 0 : i32
    %c0_i32_0 = arith.constant 0 : i32
    %c0_i32_1 = arith.constant 0 : i32
    %c0_i32_2 = arith.constant 0 : i32
    return %c0_i32, %c0_i32_0, %c0_i32_1 : i32, i32, i32
  }
  func.func @transform_6(%arg0: i32, %arg1: i32) -> (i32, i32, i32) {
    %c0_i32 = arith.constant 0 : i32
    %c0_i32_0 = arith.constant 0 : i32
    %c0_i32_1 = arith.constant 0 : i32
    %c0_i32_2 = arith.constant 0 : i32
    return %c0_i32, %c0_i32_0, %c0_i32_1 : i32, i32, i32
  }
  func.func @transform_7(%arg0: i32, %arg1: i32) -> (i32, i32, i32) {
    %c0_i32 = arith.constant 0 : i32
    %c0_i32_0 = arith.constant 0 : i32
    %c0_i32_1 = arith.constant 0 : i32
    %c0_i32_2 = arith.constant 0 : i32
    return %c0_i32, %c0_i32_0, %c0_i32_1 : i32, i32, i32
  }
  func.func @transform_8(%arg0: i32, %arg1: i32) -> (i32, i32, i32) {
    %c0_i32 = arith.constant 0 : i32
    %c0_i32_0 = arith.constant 0 : i32
    %c0_i32_1 = arith.constant 0 : i32
    %c0_i32_2 = arith.constant 0 : i32
    return %c0_i32, %c0_i32_0, %c0_i32_1 : i32, i32, i32
  }
  func.func @transform_9(%arg0: i32, %arg1: i32) -> (i32, i32, i32) {
    %c0_i32 = arith.constant 0 : i32
    %c0_i32_0 = arith.constant 0 : i32
    %c0_i32_1 = arith.constant 0 : i32
    %c0_i32_2 = arith.constant 0 : i32
    return %c0_i32, %c0_i32_0, %c0_i32_1 : i32, i32, i32
  }
  func.func @transform_10(%arg0: i32, %arg1: i32) -> (i32, i32, i32) {
    %c0_i32 = arith.constant 0 : i32
    %c0_i32_0 = arith.constant 0 : i32
    %c0_i32_1 = arith.constant 0 : i32
    %c0_i32_2 = arith.constant 0 : i32
    return %c0_i32, %c0_i32_0, %c0_i32_1 : i32, i32, i32
  }
  func.func @transform_11(%arg0: i32, %arg1: i32) -> (i32, i32, i32) {
    %c0_i32 = arith.constant 0 : i32
    %c0_i32_0 = arith.constant 0 : i32
    %c0_i32_1 = arith.constant 0 : i32
    %c0_i32_2 = arith.constant 0 : i32
    return %c0_i32, %c0_i32_0, %c0_i32_1 : i32, i32, i32
  }
  func.func @transform_12(%arg0: i32, %arg1: i32) -> (i32, i32, i32) {
    %c0_i32 = arith.constant 0 : i32
    %c0_i32_0 = arith.constant 0 : i32
    %c0_i32_1 = arith.constant 0 : i32
    %c0_i32_2 = arith.constant 0 : i32
    return %c0_i32, %c0_i32_0, %c0_i32_1 : i32, i32, i32
  }
  func.func @transform_13(%arg0: i32, %arg1: i32) -> (i32, i32, i32) {
    %c0_i32 = arith.constant 0 : i32
    %c0_i32_0 = arith.constant 0 : i32
    %c0_i32_1 = arith.constant 0 : i32
    %c0_i32_2 = arith.constant 0 : i32
    return %c0_i32, %c0_i32_0, %c0_i32_1 : i32, i32, i32
  }
  func.func @transform_14(%arg0: i32, %arg1: i32) -> (i32, i32, i32) {
    %c0_i32 = arith.constant 0 : i32
    %c0_i32_0 = arith.constant 0 : i32
    %c0_i32_1 = arith.constant 0 : i32
    %c0_i32_2 = arith.constant 0 : i32
    return %c0_i32, %c0_i32_0, %c0_i32_1 : i32, i32, i32
  }
  func.func @transform_15(%arg0: i32, %arg1: i32) -> (i32, i32, i32) {
    %c0_i32 = arith.constant 0 : i32
    %c0_i32_0 = arith.constant 0 : i32
    %c0_i32_1 = arith.constant 0 : i32
    %c0_i32_2 = arith.constant 0 : i32
    return %c0_i32, %c0_i32_0, %c0_i32_1 : i32, i32, i32
  }
  func.func @transform_16(%arg0: i32, %arg1: i32) -> (i32, i32, i32) {
    %c0_i32 = arith.constant 0 : i32
    %c0_i32_0 = arith.constant 0 : i32
    %c0_i32_1 = arith.constant 0 : i32
    %c0_i32_2 = arith.constant 0 : i32
    return %c0_i32, %c0_i32_0, %c0_i32_1 : i32, i32, i32
  }
  func.func @transform_17(%arg0: i32, %arg1: i32) -> (i32, i32, i32) {
    %c0_i32 = arith.constant 0 : i32
    %c0_i32_0 = arith.constant 0 : i32
    %c0_i32_1 = arith.constant 0 : i32
    %c0_i32_2 = arith.constant 0 : i32
    return %c0_i32, %c0_i32_0, %c0_i32_1 : i32, i32, i32
  }
  func.func @transform_18(%arg0: i32, %arg1: i32) -> (i32, i32) {
    %c0_i32 = arith.constant 0 : i32
    %c0_i32_0 = arith.constant 0 : i32
    return %arg0, %c0_i32 : i32, i32
  }
}

</mosaic_0001>

<bundles_post_ra>
// kernel: tpu_custom_call.1
= control target key start
LH: loop header
LB: loop body
LE: loop exit
PB: predicated region body
PF: predicated region fallthrough
CT: control target
= control target key end

     0   :  { %s2506_s0 = inlined_call_operand.hbm [shape: f32[16,32], index: 0, kind: input, shape index: {}]   ;;  %s2507_s1 = inlined_call_operand.hbm [shape: f32[16,32], index: 1, kind: input, shape index: {}]   ;;  %s2508_s2 = inlined_call_operand.hbm [shape: f32[16,32], index: 2, kind: input, shape index: {}]   ;;  %s2509_s3 = inlined_call_operand.vmem [shape: bf16[2,32,32], index: 3, kind: input, shape index: {}]   ;;  %s2510_s4 = inlined_call_operand.vmem [shape: f32[2,1,32], index: 4, kind: input, shape index: {}]   ;;  %s2511_s5 = inlined_call_operand.vmem [shape: bf16[2,32,32], index: 5, kind: input, shape index: {}]   ;;  %s2512_s6 = inlined_call_operand.vmem [shape: bf16[2,32,32], index: 6, kind: input, shape index: {}]   ;;  %s2513_s7 = inlined_call_operand.vmem [shape: f32[2,1,32], index: 7, kind: input, shape index: {}]   ;;  %s2514_s8 = inlined_call_operand.hbm [shape: bf16[2,32,32], index: 8, kind: input, shape index: {}]   ;;  %s2515_s9 = inlined_call_operand.vmem [shape: f32[2,1,32], index: 9, kind: input, shape index: {}]   ;;  %s2516_s10 = inlined_call_operand.vmem [shape: f32[2,1,32], index: 10, kind: input, shape index: {}]   ;;  %s2517_s11 = inlined_call_operand.hbm [shape: f32[2,1,32], index: 11, kind: input, shape index: {}]   ;;  %s2518_s12 = inlined_call_operand.hbm [shape: bf16[2,32,64], index: 12, kind: input, shape index: {}]   ;;  %s2519_s13 = inlined_call_operand.vmem [shape: f32[2,1,64], index: 13, kind: input, shape index: {}]   ;;  %s2520_s14 = inlined_call_operand.vmem [shape: bf16[2,64,32], index: 14, kind: input, shape index: {}]   ;;  %s2521_s15 = inlined_call_operand.vmem [shape: f32[2,1,32], index: 15, kind: input, shape index: {}]   ;;  %s2522_s16 = inlined_call_operand.vmem [shape: f32[2,1,32], index: 16, kind: input, shape index: {}]   ;;  %s2523_s17 = inlined_call_operand.hbm [shape: f32[2,1,32], index: 17, kind: input, shape index: {}]   ;;  %s2524_s18 = inlined_call_operand.hbm [shape: f32[16,32], index: 18, kind: output, shape index: {}]  }
   0x1   :  { %2532 = sst [smem:[#allocation22_spill]] %s2506_s0 }
   0x2   :  { %2533 = sst [smem:[#allocation23_spill]] %s2507_s1 }
   0x3   :  { %2534 = sst [smem:[#allocation24_spill]] %s2508_s2 }
   0x4   :  { %2535 = sst [smem:[#allocation25_spill]] %s2514_s8 }
   0x5   :  { %2536 = sst [smem:[#allocation26_spill]] %s2516_s10 }
   0x6   :  { %2537 = sst [smem:[#allocation27_spill]] %s2519_s13 }
   0x7   :  { %2538 = sst [smem:[#allocation28_spill]] %s2520_s14 }
   0x8   :  { %2539 = sst [smem:[#allocation29_spill]] %s2521_s15 }
   0x9   :  { %2540 = sst [smem:[#allocation30_spill]] %s2522_s16 }
   0xa   :  { %2541 = sst [smem:[#allocation31_spill]] %s2524_s18 }
   0xb   :  { %23 = vsyncpa [#allocation4], 0 }
   0xc   :  { %24 = vsyncpa [#allocation7], 0 }
   0xd   :  { %25 = vsyncpa [#allocation10], 0 }
   0xe   :  { %26 = vsyncpa [#allocation13], 0 }
   0xf   :  { %27 = vsyncpa [#allocation5], 0  ;;  %s2240_s27 = smov 0   ;;  %s2242_s28 = smov 0  }
  0x10   :  { %s2244_s29 = smov 0  }
  0x11 LB: > { %2542 = sst [smem:[#allocation21_spill]] %s2124_s29  ;;  %s2525_s30 = sadd.s32 4294967295, %s2124_s29   ;;  %s2124_s29 = sphi %s2244_s29, %s33_s29   ;;  %s2120_s28 = sphi %s2242_s28, %s2561_s28   ;;  %s2116_s27 = sphi %s2240_s27, %s2560_s27  }
  0x12   : > { %p1571_p0 = scmp.ge.s32.totalorder %s2124_s29, 1  ;;  %p469_p1 = scmp.lt.s32.totalorder %s2124_s29, 3 }
  0x13   : > { %p2260_p2 = scmp.eq.s32.totalorder %s2525_s30, 0  ;;  %s2544_s20 = sld [smem:[#allocation23_spill]] }
  0x14   : > { %p2267_p3 = pnand %p1571_p0, %p469_p1  ;;  %s2546_s8 = sld [smem:[#allocation25_spill]] }
  0x15   : > { %s2126_s25 = smov [#allocation6]   ;;  %s2127_s1 = smov [#allocation9]  }
  0x16   : > { %p1723_p4 = pneg %p2267_p3  ;;  %s502_s26 = sshll.u32 %s2126_s25, 4  ;;  %s503_s26 = int_to_ptr.vmem [resolvable:$true] %s502_s26 }
  0x17   : > { %s2530_s2 = smov 128   ;;  %s2129_s23 = smov 8  }
  0x18   : > { %p2278_p5 = pnand %p2260_p2, %p1723_p4  ;;  %s2130_s18 = smov 64  }
  0x19   : > { %s500_s21 = sshll.u32 %s2544_s20, 4  ;;  %s548_s20 = sshll.u32 %s2127_s1, 4  ;;  %s501_s21 = int_to_ptr.hbm [resolvable:$true] %s500_s21  ;;  %s549_s20 = int_to_ptr.vmem [resolvable:$true] %s548_s20 }
  0x1a   : > { %s546_s24 = sshll.u32 %s2546_s8, 4  ;;  %s580_s8 = sshll.u32 %s2518_s12, 4  ;;  %s547_s24 = int_to_ptr.hbm [resolvable:$true] %s546_s24  ;;  %s581_s8 = int_to_ptr.hbm [resolvable:$true] %s580_s8 }
  0x1b   : > { %1729 = dma.hbm_to_vmem [thread:$0]  (!%p2278_p5), %s501_s21, 256, %s503_s26, [#allocation7], %s2530_s2, %s2530_s2, %s2129_s23  }
  0x1c   : > { %s2131_s29 = smov 4   ;;  %s2132_s16 = smov [#allocation12]  }
  0x1d   : > { %1735 = dma.hbm_to_vmem [thread:$0]  (!%p2278_p5), %s547_s24, 512, %s549_s20, [#allocation10], %s2130_s18, %s2130_s18, %s2131_s29  }
  0x1e   : > { %s582_s1 = sshll.u32 %s2132_s16, 4  ;;  %s42_s14 = sadd.s32 1, %s2120_s28  ;;  %s583_s1 = int_to_ptr.vmem [resolvable:$true] %s582_s1 }
  0x1f   : > { %1741 = dma.hbm_to_vmem [thread:$0]  (!%p2278_p5), %s581_s8, 512, %s583_s1, [#allocation13], %s2130_s18, %s2130_s18, %s2131_s29  }
  0x20   : > { %s2548_s10 = sld [smem:[#allocation22_spill]]  ;;  %p43_p6 = scmp.ge.s32.totalorder %s42_s14, 2 }
  0x21   : > { %s2549_s25 = sld [smem:[#allocation24_spill]]  ;;  %s2133_s24 = smov [#allocation3]  }
  0x22   : > { %s2563_s14 = smov (%p43_p6, %s42_s14), 0  ;;  %s485_s20 = sshll.u32 %s2133_s24, 4  ;;  %s486_s20 = int_to_ptr.vmem [resolvable:$true] %s485_s20 }
  0x23   : > { %s2550_s8 = smov 128   ;;  %s2134_s13 = smov [#allocation8]  }
  0x24   : > { %s566_s18 = sshll.u32 %s2517_s11, 4  ;;  %s2135_s29 = smov [#allocation11]   ;;  %s567_s18 = int_to_ptr.hbm [resolvable:$true] %s566_s18 }
  0x25   : > { %s568_s1 = sshll.u32 %s2135_s29, 4  ;;  %s2137_s24 = smov 1   ;;  %s569_s1 = int_to_ptr.vmem [resolvable:$true] %s568_s1 }
  0x26   : > { %s483_s21 = sshll.u32 %s2548_s10, 4  ;;  %s519_s10 = sshll.u32 %s2134_s13, 4  ;;  %s484_s21 = int_to_ptr.hbm [resolvable:$true] %s483_s21  ;;  %s520_s10 = int_to_ptr.vmem [resolvable:$true] %s519_s10 }
  0x27   : > { %s517_s2 = sshll.u32 %s2549_s25, 4  ;;  %s2136_s25 = smov 16   ;;  %s518_s2 = int_to_ptr.hbm [resolvable:$true] %s517_s2 }
  0x28   : > { %1726 = dma.hbm_to_vmem [thread:$0]  (!%p2278_p5), %s484_s21, 256, %s486_s20, [#allocation4], %s2550_s8, %s2550_s8, %s2129_s23  }
  0x29   : > { %1732 = dma.hbm_to_vmem [thread:$0]  (!%p2278_p5), %s518_s2, 256, %s520_s10, [#allocation7], %s2550_s8, %s2550_s8, %s2129_s23  }
  0x2a   : > { %s606_s21 = sshll.u32 %s2523_s17, 4  ;;  %s2138_s20 = smov [#allocation14]   ;;  %s607_s21 = int_to_ptr.hbm [resolvable:$true] %s606_s21 }
  0x2b   : > { %1738 = dma.hbm_to_vmem [thread:$0]  (!%p2278_p5), %s567_s18, 32, %s569_s1, [#allocation10], %s2136_s25, %s2136_s25, %s2137_s24  }
  0x2c   : > { %s608_s13 = sshll.u32 %s2138_s20, 4  ;;  %624 = sbr.rel (%p2267_p3) target bundleno = 1968 (0x7b0), region = 92  ;;  %s609_s13 = int_to_ptr.vmem [resolvable:$true] %s608_s13 }
  0x2d   : > { %1744 = dma.hbm_to_vmem [thread:$0]  (!%p2278_p5), %s607_s21, 32, %s609_s13, [#allocation13], %s2136_s25, %s2136_s25, %s2137_s24  }
  0x31   : > { %2095 = dma.done.wait (%p2260_p2), [#allocation4], 256  }
  0x32   : > { %2097 = vsyncadd (%p2260_p2), [#allocation4], 4294967040 }
  0x33   : > { %2099 = dma.done.wait (%p2260_p2), [#allocation7], 512  }
  0x34   : > { %2101 = vsyncadd (%p2260_p2), [#allocation7], 4294966784 }
  0x35   : > { %2103 = dma.done.wait (%p2260_p2), [#allocation10], 544  }
  0x36   : > { %2105 = vsyncadd (%p2260_p2), [#allocation10], 4294966752 }
  0x37   : > { %2107 = dma.done.wait (%p2260_p2), [#allocation13], 544  }
  0x38   : > { %2109 = vsyncadd (%p2260_p2), [#allocation13], 4294966752  ;;  %p1587_p7 = scmp.ne.s32.totalorder %s2116_s27, 0 }
  0x3a   : > { %707 = sbr.rel (%p1587_p7) target bundleno = 66 (0x42), region = 124 }
  0x3f   : > { %v708_v0 = vld [vmem:[#allocation3] sm:$0xff]  ;;  %vm710_vm0 = vcmask 261120   ;;  %v709_v1 = vld [vmem:[#allocation3 + $0x8] sm:$0xff] }
  0x40   : > { %711 = vst.msk [vmem:[#allocation2] sm:$0xff] %vm710_vm0, %v708_v0 }
  0x41   : > { %712 = vst.msk [vmem:[#allocation2 + $0x8] sm:$0xff] %vm710_vm0, %v709_v1 }
  0x42 PF: > { %s2343_s22 = sshll.u32 %s2116_s27, 4  ;;  %v716_v4 = vld [vmem:[#allocation6] sm:$0xff]  ;;  %v717_v5 = vld [vmem:[#allocation6 + $0x8] sm:$0xff]  ;;  %s729_s18 = scalar_lea.vmem %s2510_s4, %s2116_s27  ;;  %vm746_vm1 = vcmask 261120   ;;  %vm845_vm2 = vcmask 130048   ;;  %vm886_vm3 = vcmask 64512  }
  0x43   : > { %s765_s0 = scalar_lea.vmem %s2511_s5, %s2343_s22  ;;  %s724_s10 = scalar_lea.vmem %s2509_s3, %s2343_s22  ;;  %v718_v10 = vpack.c.bf16 %v717_v5, %v716_v4  ;;  %v1809_v12 = vld [vmem:[%s729_s18] ss:$0 sm:$0xff]  ;;  %v719_v49 = vld [vmem:[#allocation8] sm:$0xff]  ;;  %v720_v50 = vld [vmem:[#allocation8 + $0x8] sm:$0xff]  ;;  %vm940_vm4 = vcmask 1043456  }
  0x44   : > { %v1676_v2 = vld [vmem:[%s765_s0 + $0x8] sm:$0xff]  ;;  %v1675_v7 = vld [vmem:[%s765_s0] sm:$0xff]  ;;  %s2139_s29 = smov 112   ;;  %s800_s26 = scalar_lea.vmem %s2512_s6, %s2343_s22  ;;  %v721_v51 = vpack.c.bf16 %v720_v50, %v719_v49 }
  0x45   : > { %v1673_v3 = vld [vmem:[%s724_s10 + $0x8] sm:$0xff]  ;;  %791 = vmatpush.bf16.msra.mxu1 %v1676_v2  ;;  %v1672_v8 = vld [vmem:[%s724_s10] sm:$0xff]  ;;  %s805_s24 = scalar_lea.vmem %s2513_s7, %s2116_s27  ;;  %s1146_s20 = scalar_lea.vmem [#allocation9], %s2343_s22 }
  0x46   : > { %756 = vmatpush.bf16.msra.mxu0 %v1673_v3  ;;  %v1679_v47 = vld [vmem:[%s800_s26 + $0x8] sm:$0xff]  ;;  %v1678_v48 = vld [vmem:[%s800_s26] sm:$0xff]  ;;  %s1151_s2 = scalar_lea.vmem %s2515_s9, %s2116_s27  ;;  %s2140_s0 = smov 16  }
  0x47   : > { %v2353_v6 = vld [vmem:[#allocation2] sm:$0xff]  ;;  %831 = vmatpush.bf16.msra.mxu2 %v1679_v47  ;;  %s2551_s10 = sld [smem:[#allocation26_spill]]  ;;  %s1245_s16 = scalar_lea.vmem [#allocation11], %s2116_s27 }
  0x48   : > { %v2355_v9 = vld [vmem:[#allocation2 + $0x8] sm:$0xff]  ;;  %s2552_s1 = sld [smem:[#allocation27_spill]]  ;;  %s1254_s26 = scalar_lea.vmem [#allocation12], %s2343_s22 }
  0x49   : > { %v715_v11 = vpack.c.bf16 %v2355_v9, %v2353_v6  ;;  %792 = vmatpush.bf16.msra.mxu1 %v1675_v7  ;;  %v1810_v7 = vld [vmem:[%s805_s24] ss:$0 sm:$0xff]  ;;  %s1686_s19 = sshll.u32 %s2116_s27, 5  ;;  %s2554_s23 = sld [smem:[#allocation28_spill]] }
  0x4a   : > { %757 = vmatpush.bf16.msra.mxu0 %v1672_v8  ;;  %s1407_s22 = scalar_lea.vmem [#allocation14], %s2116_s27  ;;  %p1666_p8 = scmp.ne.s32.totalorder %s2116_s27, 1 }
  0x4b   : > { %832 = vmatpush.bf16.msra.mxu2 %v1678_v48 }
  0x4c   : > { %1608 = vmatmul.msk.bf16.vlgmr.msra.gmra.mxu1 %vm746_vm1, %v718_v10 }
  0x4d   : > { %1598 = vmatmul.msk.bf16.vlgmr.msra.gmra.mxu0 %vm746_vm1, %v715_v11  ;;  %s1238_s15 = scalar_lea.vmem %s2551_s10, %s2116_s27 }
  0x4e   : > { %1618 = vmatmul.msk.bf16.vlgmr.msra.gmra.mxu2 %vm746_vm1, %v721_v51  ;;  %s1259_s30 = scalar_lea.vmem %s2552_s1, %s2116_s27 }
  0x4f   : > { %s1298_s8 = scalar_lea.vmem %s2554_s23, %s1686_s19 }
  0xc9   : > { %v794_v13 = vpop.f32.mrf.mxu1 }
  0xca   : > { %v759_v14 = vpop.f32.mrf.mxu0  ;;  %v841_v15 = vpack.c.bf16 %v794_v13, %v794_v13 }
  0xcb   : > { %v760_v16 = vadd.f32 %v1809_v12, %v759_v14 }
  0xcc   : > { %v850_v18 = vsel %vm845_vm2, %v841_v15, 0  ;;  %v982_v19 = vunpack.c.l.b16 %v841_v15 }
  0xcd   : > { %v839_v17 = vpack.c.bf16 %v760_v16, %v760_v16  ;;  %859 = vmatpush.bf16.xpose.msra.mxu3 %v850_v18 }
  0xce   : > { %v983_v20 = vpack.c.b16 %v982_v19, %v982_v19 }
  0xcf   : > { %v977_v21 = vunpack.c.l.b16 %v839_v17 }
  0xd0   : > { %984 = vrot.lane.b32.xlu0 %v983_v20, %s2139_s29 }
  0xd1   : > { %v978_v22 = vpack.c.b16 %v977_v21, %v977_v21  ;;  %v796_v23 = vpop.f32.mrf.mxu1  ;;  %v834_v8 = vpop.f32.mrf.mxu2 }
  0xd2   : > { %v761_v24 = vpop.f32.mrf.mxu0  ;;  %v842_v25 = vpack.c.bf16 %v796_v23, %v796_v23  ;;  %v835_v10 = vadd.f32 %v1810_v7, %v834_v8 }
  0xd3   : > { %v762_v26 = vadd.f32 %v1809_v12, %v761_v24  ;;  %979 = vrot.lane.b32.xlu1 %v978_v22, %s2139_s29 }
  0xd4   : > { %v1011_v27 = vunpack.c.l.b16 %v842_v25  ;;  %1619 = vmatmul.msk.bf16.vlgmr.msra.gmra.mxu3 %vm845_vm2, %v839_v17  ;;  %v869_v29 = vsel %vm845_vm2, %v842_v25, 0  ;;  %v843_v11 = vpack.c.bf16 %v835_v10, %v835_v10 }
  0xd5   : > { %v840_v28 = vpack.c.bf16 %v762_v26, %v762_v26  ;;  %878 = vmatpush.bf16.xpose.msrb.mxu0 %v869_v29 }
  0xd6   : > { %v1012_v30 = vpack.c.b16 %v1011_v27, %v1011_v27  ;;  %v1087_v12 = vunpack.c.l.b16 %v843_v11  ;;  %v942_v21 = vsel %vm940_vm4, %v843_v11, 0 }
  0xd7   : > { %v1006_v31 = vunpack.c.l.b16 %v840_v28  ;;  %951 = vmatpush.bf16.msrb.mxu1 %v942_v21 }
  0xd8   : > { %1013 = vrot.lane.b32.xlu0 %v1012_v30, %s2139_s29  ;;  %v1088_v13 = vpack.c.b16 %v1087_v12, %v1087_v12 }
  0xd9   : > { %v1007_v32 = vpack.c.b16 %v1006_v31, %v1006_v31  ;;  %v836_v19 = vpop.f32.mrf.mxu2 }
  0xda   : > { %v837_v20 = vadd.f32 %v1810_v7, %v836_v19 }
  0xdb   : > { %1008 = vrot.lane.b32.xlu1 %v1007_v32, %s2139_s29 }
  0xdc   : > { %1620 = vmatmul.msk.bf16.vlgmr.msrb.gmra.mxu0 %vm845_vm2, %v840_v28  ;;  %v844_v23 = vpack.c.bf16 %v837_v20, %v837_v20 }
  0xde   : > { %v961_v24 = vsel %vm940_vm4, %v844_v23, 0 }
  0xdf   : > { %970 = vmatpush.bf16.msrb.mxu2 %v961_v24 }
 0x142   : > { %v985_v33 = vpop.permute.xlu0 %984 }
 0x143   : > { %v990_v34 = vsel %vm845_vm2, %v985_v33, 0 }
 0x144   : > { %999 = vmatpush.bf16.xpose.msrb.mxu3 %v990_v34 }
 0x145   : > { %v980_v35 = vpop.permute.xlu1 %979 }
 0x14a   : > { %v1014_v36 = vpop.permute.xlu0 %1013 }
 0x14b   : > { %v1019_v37 = vsel %vm845_vm2, %v1014_v36, 0  ;;  %1623 = vmatmul.msk.bf16.vlgmr.msrb.gmra.mxu3 %vm845_vm2, %v980_v35 }
 0x14c   : > { %1028 = vmatpush.bf16.xpose.msra.mxu0 %v1019_v37 }
 0x14d   : > { %v1009_v38 = vpop.permute.xlu1 %1008 }
 0x153   : > { %1624 = vmatmul.msk.bf16.vlgmr.msra.gmra.mxu0 %vm845_vm2, %v1009_v38 }
 0x157   : > { %v861_v39 = vpop.f32.mrf.mxu3 }
 0x158   : > { %v884_v44 = vmul.f32 0.25, %v861_v39 }
 0x159   : > { %v880_v40 = vpop.f32.mrf.mxu0 }
 0x15a   : > { %v885_v41 = vmul.f32 0.25, %v880_v40  ;;  %v887_v46 = vsel %vm886_vm3, %v884_v44, -inf }
 0x15c   : > { %v890_v42 = vsel %vm886_vm3, %v885_v41, -inf }
 0x15d   : > { %891 = vmax.xlane.f32.xlu2 %v890_v42 }
 0x15f   : > { %v863_v43 = vpop.f32.mrf.mxu3 }
 0x161   : > { %v882_v45 = vpop.f32.mrf.mxu0 }
 0x165   : > { %888 = vmax.xlane.f32.xlu2 %v887_v46 }
 0x1ce   : > { %v1001_v52 = vpop.f32.mrf.mxu3 }
 0x1cf   : > { %v1034_v53 = vmul.f32 0.25, %v1001_v52 }
 0x1d0   : > { %v892_v54 = vpop.xlane.xlu2 %891  ;;  %v1030_v55 = vpop.f32.mrf.mxu0 }
 0x1d1   : > { %v1035_v56 = vmul.f32 0.25, %v1030_v55  ;;  %v1036_v57 = vsel %vm886_vm3, %v1034_v53, -inf  ;;  %v894_v63 = vsub.f32 %v885_v41, %v892_v54 }
 0x1d2   : > { %1037 = vmax.xlane.f32.xlu1 %v1036_v57 }
 0x1d3   : > { %v1039_v58 = vsel %vm886_vm3, %v1035_v56, -inf  ;;  %v897_v1 = vmul.f32 1.442695, %v894_v63 }
 0x1d4   : > { %1040 = vmax.xlane.f32.xlu0 %v1039_v58 }
 0x1d6   : > { %v1003_v59 = vpop.f32.mrf.mxu3 }
 0x1d8   : > { %v1032_v60 = vpop.f32.mrf.mxu0  ;;  %v889_v61 = vpop.xlane.xlu2 %888 }
 0x1d9   : > { %v893_v62 = vsub.f32 %v884_v44, %v889_v61  ;;  %v1111_v44 = vunpack.c.l.b16 %v844_v23 }
 0x1db   : > { %v895_v0 = vmul.f32 1.442695, %v893_v62  ;;  %v1112_v51 = vpack.c.b16 %v1111_v44, %v1111_v44 }
 0x1dd   : > { %1818 = vpow2.f32 %v895_v0 }
 0x1de   : > { %1820 = vpow2.f32 %v897_v1 }
 0x1e3   : > { %v1819_v2 = vpop.eup %1818 }
 0x1e4   : > { %v899_v3 = vsel %vm886_vm3, %v1819_v2, 0.0  ;;  %v2391_v4 = vpop.eup %1820 }
 0x1e5   : > { %900 = vadd.xlane.f32.xlu2 %v899_v3  ;;  %v902_v5 = vsel %vm886_vm3, %v2391_v4, 0.0 }
 0x1e8   : > { %1089 = vrot.lane.b32.xlu0 %v1088_v13, %s2139_s29 }
 0x1ed   : > { %903 = vadd.xlane.f32.xlu2 %v902_v5 }
 0x245   : > { %v1038_v14 = vpop.xlane.xlu1 %1037 }
 0x246   : > { %v1042_v15 = vsub.f32 %v1034_v53, %v1038_v14 }
 0x247   : > { %v1041_v16 = vpop.xlane.xlu0 %1040 }
 0x248   : > { %v1044_v17 = vmul.f32 1.442695, %v1042_v15  ;;  %v1043_v18 = vsub.f32 %v1035_v56, %v1041_v16 }
 0x24a   : > { %1822 = vpow2.f32 %v1044_v17  ;;  %v1046_v22 = vmul.f32 1.442695, %v1043_v18 }
 0x24c   : > { %1824 = vpow2.f32 %v1046_v22 }
 0x250   : > { %v2398_v25 = vpop.eup %1822 }
 0x251   : > { %v1048_v26 = vsel %vm886_vm3, %v2398_v25, 0.0 }
 0x252   : > { %1049 = vadd.xlane.f32.xlu2 %v1048_v26  ;;  %v2402_v27 = vpop.eup %1824 }
 0x253   : > { %v1051_v29 = vsel %vm886_vm3, %v2402_v27, 0.0 }
 0x258   : > { %v901_v28 = vpop.xlane.xlu2 %900 }
 0x259   : > { %1826 = vrcp.f32 %v901_v28  ;;  %v916_v34 = vand.u32 2147483648, %v901_v28  ;;  %v914_v36 = vand.u32 2147483647, %v901_v28  ;;  %vm910_vm6 = vweird.f32 %v901_v28 }
 0x25a   : > { %1052 = vadd.xlane.f32.xlu2 %v1051_v29  ;;  %v1090_v57 = vpop.permute.xlu0 %1089 }
 0x25b   : > { %v917_v39 = vor.u32 1.1754944e-38, %v916_v34  ;;  %vm915_vm8 = vcmp.eq.f32.partialorder %v914_v36, 8.507059e+37  ;;  %v1095_v58 = vsel %vm940_vm4, %v1090_v57, 0 }
 0x25c   : > { %1104 = vmatpush.bf16.msra.mxu1 %v1095_v58 }
 0x25f   : > { %v1827_v30 = vpop.eup %1826 }
 0x260   : > { %v906_v31 = vmul.f32 %v1827_v30, %v901_v28  ;;  %v904_v32 = vpop.xlane.xlu2 %903  ;;  %vm911_vm5 = vweird.f32 %v1827_v30 }
 0x261   : > { %1828 = vrcp.f32 %v904_v32  ;;  %vm912_vm7 = vmor %vm910_vm6, %vm911_vm5  ;;  %v931_v46 = vand.u32 2147483648, %v904_v32  ;;  %v929_v48 = vand.u32 2147483647, %v904_v32  ;;  %vm925_vm10 = vweird.f32 %v904_v32 }
 0x262   : > { %v907_v33 = vsub.f32 1.0, %v906_v31 }
 0x263   : > { %v932_v52 = vor.u32 1.1754944e-38, %v931_v46  ;;  %vm930_vm12 = vcmp.eq.f32.partialorder %v929_v48, 8.507059e+37 }
 0x264   : > { %v908_v35 = vmul.f32 %v1827_v30, %v907_v33 }
 0x266   : > { %v909_v37 = vadd.f32 %v1827_v30, %v908_v35  ;;  %v1681_v35 = vld [vmem:[%s1146_s20] sm:$0xff] }
 0x267   : > { %v1829_v38 = vpop.eup %1828 }
 0x268   : > { %v921_v40 = vmul.f32 %v1829_v38, %v904_v32  ;;  %v913_v41 = vsel %vm912_vm7, %v1827_v30, %v909_v37  ;;  %vm926_vm9 = vweird.f32 %v1829_v38  ;;  %v1682_v30 = vld [vmem:[%s1146_s20 + $0x8] sm:$0xff]  ;;  %s2553_s20 = sld [smem:[#allocation29_spill]] }
 0x269   : > { %v918_v42 = vsel %vm915_vm8, %v917_v39, %v913_v41  ;;  %vm927_vm11 = vmor %vm925_vm10, %vm926_vm9  ;;  %1177 = vmatpush.bf16.msra.mxu3 %v1682_v30 }
 0x26a   : > { %v922_v43 = vsub.f32 1.0, %v921_v40  ;;  %v919_v45 = vmul.f32 %v1819_v2, %v918_v42  ;;  %v1811_v42 = vld [vmem:[%s1151_s2] ss:$0 sm:$0xff] }
 0x26c   : > { %v923_v47 = vmul.f32 %v1829_v38, %v922_v43  ;;  %v935_v49 = vpack.c.bf16 %v919_v45, %v919_v45 }
 0x26d   : > { %1178 = vmatpush.bf16.msra.mxu3 %v1681_v35  ;;  %v1690_v35 = vld [vmem:[%s1298_s8 + $0x18] sm:$0xff] }
 0x26e   : > { %v924_v50 = vadd.f32 %v1829_v38, %v923_v47  ;;  %1621 = vmatmul.msk.bf16.vlgmr.msrb.gmra.mxu1 %vm886_vm3, %v935_v49  ;;  %s1307_s13 = scalar_lea.vmem %s2553_s20, %s2116_s27 }
 0x26f   : > { %1344 = vmatpush.bf16.msrb.mxu1 %v1690_v35 }
 0x270   : > { %v928_v53 = vsel %vm927_vm11, %v1829_v38, %v924_v50 }
 0x271   : > { %v933_v54 = vsel %vm930_vm12, %v932_v52, %v928_v53 }
 0x272   : > { %1113 = vrot.lane.b32.xlu2 %v1112_v51, %s2139_s29  ;;  %v934_v55 = vmul.f32 %v2391_v4, %v933_v54  ;;  %v2141_v51 = vmov 32.0  }
 0x274   : > { %v936_v56 = vpack.c.bf16 %v934_v55, %v934_v55 }
 0x276   : > { %1622 = vmatmul.msk.bf16.vlgmr.msrb.gmra.mxu2 %vm886_vm3, %v936_v56 }
 0x2c5   : > { %v1050_v59 = vpop.xlane.xlu2 %1049 }
 0x2c6   : > { %1830 = vrcp.f32 %v1050_v59  ;;  %v1065_v0 = vand.u32 2147483648, %v1050_v59  ;;  %v1063_v2 = vand.u32 2147483647, %v1050_v59  ;;  %vm1059_vm14 = vweird.f32 %v1050_v59 }
 0x2c8   : > { %v1066_v5 = vor.u32 1.1754944e-38, %v1065_v0  ;;  %vm1064_vm0 = vcmp.eq.f32.partialorder %v1063_v2, 8.507059e+37  ;;  %v1685_v2 = vld [vmem:[%s1254_s26 + $0x8] sm:$0xff] }
 0x2c9   : > { %1285 = vmatpush.bf16.msrb.mxu0 %v1685_v2 }
 0x2cc   : > { %v1831_v60 = vpop.eup %1830 }
 0x2cd   : > { %v1055_v61 = vmul.f32 %v1831_v60, %v1050_v59  ;;  %v1053_v62 = vpop.xlane.xlu2 %1052  ;;  %vm1060_vm13 = vweird.f32 %v1831_v60 }
 0x2ce   : > { %1832 = vrcp.f32 %v1053_v62  ;;  %vm1061_vm15 = vmor %vm1059_vm14, %vm1060_vm13  ;;  %v1080_v15 = vand.u32 2147483648, %v1053_v62  ;;  %v1078_v17 = vand.u32 2147483647, %v1053_v62  ;;  %vm1074_vm6 = vweird.f32 %v1053_v62 }
 0x2cf   : > { %v1056_v63 = vsub.f32 1.0, %v1055_v61  ;;  %1834 = vrcp.f32 %v2141_v51  ;;  %vm1336_vm13 = vcmask 523264  }
 0x2d0   : > { %v1081_v20 = vor.u32 1.1754944e-38, %v1080_v15  ;;  %vm1079_vm8 = vcmp.eq.f32.partialorder %v1078_v17, 8.507059e+37 }
 0x2d1   : > { %v1057_v1 = vmul.f32 %v1831_v60, %v1056_v63 }
 0x2d3   : > { %v1058_v3 = vadd.f32 %v1831_v60, %v1057_v1 }
 0x2d4   : > { %v1833_v4 = vpop.eup %1832 }
 0x2d5   : > { %v1062_v7 = vsel %vm1061_vm15, %v1831_v60, %v1058_v3  ;;  %v1070_v8 = vmul.f32 %v1833_v4, %v1053_v62  ;;  %v1114_v10 = vpop.permute.xlu2 %1113  ;;  %vm1075_vm5 = vweird.f32 %v1833_v4  ;;  %v1835_v52 = vpop.eup %1834 }
 0x2d6   : > { %v1067_v11 = vsel %vm1064_vm0, %v1066_v5, %v1062_v7  ;;  %v1119_v12 = vsel %vm940_vm4, %v1114_v10, 0  ;;  %vm1076_vm7 = vmor %vm1074_vm6, %vm1075_vm5  ;;  %v1194_v53 = vmul.f32 32.0, %v1835_v52  ;;  %v1684_v5 = vld [vmem:[%s1254_s26] sm:$0xff] }
 0x2d7   : > { %v1068_v13 = vmul.f32 %v2398_v25, %v1067_v11  ;;  %v1071_v14 = vsub.f32 1.0, %v1070_v8  ;;  %1128 = vmatpush.bf16.msra.mxu2 %v1119_v12  ;;  %1286 = vmatpush.bf16.msrb.mxu0 %v1684_v5 }
 0x2d9   : > { %v1072_v16 = vmul.f32 %v1833_v4, %v1071_v14  ;;  %v1084_v18 = vpack.c.bf16 %v1068_v13, %v1068_v13 }
 0x2db   : > { %v1073_v19 = vadd.f32 %v1833_v4, %v1072_v16  ;;  %1625 = vmatmul.msk.bf16.vlgmr.msra.gmra.mxu1 %vm886_vm3, %v1084_v18 }
 0x2dd   : > { %v1077_v21 = vsel %vm1076_vm7, %v1833_v4, %v1073_v19 }
 0x2de   : > { %v1082_v22 = vsel %vm1079_vm8, %v1081_v20, %v1077_v21 }
 0x2df   : > { %v1083_v23 = vmul.f32 %v2402_v27, %v1082_v22 }
 0x2e1   : > { %v1085_v24 = vpack.c.bf16 %v1083_v23, %v1083_v23 }
 0x2e3   : > { %1626 = vmatmul.msk.bf16.vlgmr.msra.gmra.mxu2 %vm886_vm3, %v1085_v24  ;;  %v1812_v24 = vld [vmem:[%s1238_s15] ss:$0 sm:$0xff] }
 0x2eb   : > { %v953_v25 = vpop.f32.mrf.mxu1 }
 0x2f3   : > { %v955_v26 = vpop.f32.mrf.mxu1 }
 0x2f9   : > { %v972_v28 = vpop.f32.mrf.mxu2 }
 0x301   : > { %v974_v29 = vpop.f32.mrf.mxu2 }
 0x302   : > { %v1813_v29 = vld [vmem:[%s1245_s16] ss:$0 sm:$0xff] }
 0x358   : > { %v1106_v31 = vpop.f32.mrf.mxu1 }
 0x360   : > { %v1108_v32 = vpop.f32.mrf.mxu1 }
 0x366   : > { %v1130_v33 = vpop.f32.mrf.mxu2 }
 0x367   : > { %v1804_v34 = vpack.i.bf16 %v1130_v33, %v1106_v31 }
 0x369   : > { %1805 = vrot.lane.b32.xlu1 %v1804_v34, %s2140_s0 }
 0x36e   : > { %v1132_v27 = vpop.f32.mrf.mxu2 }
 0x3db   : > { %v1806_v36 = vpop.permute.xlu1 %1805 }
 0x3dc   : > { %v1808_v37 = vunpack.i.h.bf16 %v1806_v36  ;;  %v1807_v38 = vunpack.i.l.bf16 %v1806_v36  ;;  %v1689_v36 = vld [vmem:[%s1298_s8 + $0x10] sm:$0xff] }
 0x3dd   : > { %1345 = vmatpush.bf16.msrb.mxu1 %v1689_v36 }
 0x3de   : > { %v1143_v39 = vsel %vm845_vm2, %v972_v28, %v1808_v37  ;;  %v1142_v40 = vsel %vm845_vm2, %v953_v25, %v1807_v38  ;;  %vm1198_vm2 = vweird.f32 %v1835_v52  ;;  %v1688_v37 = vld [vmem:[%s1298_s8 + $0x8] sm:$0xff]  ;;  %v1687_v38 = vld [vmem:[%s1298_s8] sm:$0xff] }
 0x3df   : > { %v1144_v41 = vpack.c.bf16 %v1143_v39, %v1142_v40  ;;  %v1814_v40 = vld [vmem:[%s1259_s30] ss:$0 sm:$0xff]  ;;  %s2555_s30 = sld [smem:[#allocation30_spill]] }
 0x3e1   : > { %1636 = vmatmul.msk.bf16.vlgmr.msra.gmra.mxu3 %vm746_vm1, %v1144_v41  ;;  %1346 = vmatpush.bf16.msrb.mxu1 %v1688_v37 }
 0x3e5   : > { %1347 = vmatpush.bf16.msrb.mxu1 %v1687_v38  ;;  %s1400_s26 = scalar_lea.vmem %s2555_s30, %s2116_s27 }
 0x464   : > { %v1180_v43 = vpop.f32.mrf.mxu3 }
 0x465   : > { %v1181_v44 = vadd.f32 %v1811_v42, %v1180_v43 }
 0x467   : > { %v1185_v45 = vadd.f32 %v1181_v44, %v2353_v6  ;;  %v1195_v6 = vsub.f32 1.0, %v1194_v53 }
 0x469   : > { %v1187_v46 = vsel %vm746_vm1, %v1185_v45, 0.0  ;;  %v1196_v54 = vmul.f32 %v1835_v52, %v1195_v6 }
 0x46a   : > { %1188 = vadd.xlane.f32.xlu2 %v1187_v46 }
 0x46b   : > { %v1197_v55 = vadd.f32 %v1835_v52, %v1196_v54 }
 0x46c   : > { %v1182_v47 = vpop.f32.mrf.mxu3 }
 0x46d   : > { %v1183_v48 = vadd.f32 %v1811_v42, %v1182_v47  ;;  %v2433_v56 = vsel %vm1198_vm2, %v1835_v52, %v1197_v55  ;;  %v1815_v47 = vld [vmem:[%s1307_s13] ss:$0 sm:$0xff] }
 0x46f   : > { %v1186_v49 = vadd.f32 %v1183_v48, %v2355_v9 }
 0x471   : > { %v1190_v50 = vsel %vm746_vm1, %v1186_v49, 0.0 }
 0x472   : > { %1191 = vadd.xlane.f32.xlu0 %v1190_v50 }
 0x4dd   : > { %v1189_v57 = vpop.xlane.xlu2 %1188 }
 0x4de   : > { %v1200_v58 = vmul.f32 %v2433_v56, %v1189_v57 }
 0x4e0   : > { %v1202_v59 = vsub.f32 %v1185_v45, %v1200_v58 }
 0x4e2   : > { %v1204_v9 = vmul.f32 %v1202_v59, %v1202_v59 }
 0x4e4   : > { %v1206_v60 = vsel %vm746_vm1, %v1204_v9, 0.0 }
 0x4e5   : > { %v1192_v61 = vpop.xlane.xlu0 %1191  ;;  %1207 = vadd.xlane.f32.xlu1 %v1206_v60 }
 0x4e6   : > { %v1201_v62 = vmul.f32 %v2433_v56, %v1192_v61 }
 0x4e8   : > { %v1203_v63 = vsub.f32 %v1186_v49, %v1201_v62 }
 0x4ea   : > { %v1205_v0 = vmul.f32 %v1203_v63, %v1203_v63 }
 0x4ec   : > { %v1209_v1 = vsel %vm746_vm1, %v1205_v0, 0.0 }
 0x4ed   : > { %1210 = vadd.xlane.f32.xlu2 %v1209_v1 }
 0x558   : > { %v1208_v3 = vpop.xlane.xlu1 %1207 }
 0x559   : > { %v1212_v4 = vmul.f32 %v1208_v3, %v2433_v56 }
 0x55b   : > { %v1214_v7 = vadd.f32 1e-05, %v1212_v4 }
 0x55d   : > { %1836 = vrsqrt.f32 %v1214_v7  ;;  %vm1222_vm4 = vweird.f32 %v1214_v7 }
 0x560   : > { %v1211_v8 = vpop.xlane.xlu2 %1210 }
 0x561   : > { %v1213_v10 = vmul.f32 %v1211_v8, %v2433_v56 }
 0x563   : > { %v1837_v11 = vpop.eup %1836  ;;  %v1215_v12 = vadd.f32 1e-05, %v1213_v10 }
 0x564   : > { %v1217_v13 = vmul.f32 %v1837_v11, %v1214_v7  ;;  %vm1223_vm3 = vweird.f32 %v1837_v11 }
 0x565   : > { %1838 = vrsqrt.f32 %v1215_v12  ;;  %vm1224_vm9 = vmor %vm1222_vm4, %vm1223_vm3  ;;  %vm1232_vm11 = vweird.f32 %v1215_v12 }
 0x566   : > { %v1218_v14 = vmul.f32 %v1837_v11, %v1217_v13 }
 0x568   : > { %v1219_v15 = vmul.f32 0.5, %v1218_v14 }
 0x56a   : > { %v1220_v16 = vsub.f32 1.5, %v1219_v15 }
 0x56b   : > { %v1839_v17 = vpop.eup %1838 }
 0x56c   : > { %v1221_v18 = vmul.f32 %v1837_v11, %v1220_v16  ;;  %v1227_v19 = vmul.f32 %v1839_v17, %v1215_v12  ;;  %vm1233_vm10 = vweird.f32 %v1839_v17 }
 0x56d   : > { %vm1234_vm12 = vmor %vm1232_vm11, %vm1233_vm10 }
 0x56e   : > { %v1228_v20 = vmul.f32 %v1839_v17, %v1227_v19  ;;  %v1225_v21 = vsel %vm1224_vm9, %v1837_v11, %v1221_v18  ;;  %v1817_v19 = vld [vmem:[%s1407_s22] ss:$0 sm:$0xff] }
 0x56f   : > { %v1236_v25 = vmul.f32 %v1225_v21, %v1202_v59 }
 0x570   : > { %v1229_v22 = vmul.f32 0.5, %v1228_v20 }
 0x571   : > { %v1243_v30 = vmul.f32 %v1812_v24, %v1236_v25 }
 0x572   : > { %v1230_v23 = vsub.f32 1.5, %v1229_v22 }
 0x573   : > { %v1250_v33 = vadd.f32 %v1813_v29, %v1243_v30 }
 0x574   : > { %v1231_v26 = vmul.f32 %v1839_v17, %v1230_v23 }
 0x576   : > { %v1235_v28 = vsel %vm1234_vm12, %v1839_v17, %v1231_v26  ;;  %v1816_v17 = vld [vmem:[%s1400_s26] ss:$0 sm:$0xff] }
 0x577   : > { %v1237_v31 = vmul.f32 %v1235_v28, %v1203_v63 }
 0x579   : > { %v1244_v32 = vmul.f32 %v1812_v24, %v1237_v31 }
 0x57b   : > { %v1251_v34 = vadd.f32 %v1813_v29, %v1244_v32 }
 0x57d   : > { %v1252_v27 = vpack.c.bf16 %v1251_v34, %v1250_v33 }
 0x57f   : > { %1646 = vmatmul.msk.bf16.vlgmr.msrb.gmra.mxu0 %vm746_vm1, %v1252_v27 }
 0x5fc   : > { %v1288_v39 = vpop.f32.mrf.mxu0 }
 0x5fd   : > { %v1289_v41 = vadd.f32 %v1814_v40, %v1288_v39 }
 0x5ff   : > { %v1293_v44 = vmax.f32 %v1289_v41, 0.0 }
 0x604   : > { %v1290_v42 = vpop.f32.mrf.mxu0 }
 0x605   : > { %v1291_v43 = vadd.f32 %v1814_v40, %v1290_v42 }
 0x607   : > { %v1294_v45 = vmax.f32 %v1291_v43, 0.0 }
 0x609   : > { %v1295_v46 = vpack.c.bf16 %v1294_v45, %v1293_v44 }
 0x60b   : > { %1665 = vmatmul.msk.bf16.vlgmr.msrb.gmra.mxu1 %vm1336_vm13, %v1295_v46 }
 0x688   : > { %v1349_v48 = vpop.f32.mrf.mxu1 }
 0x689   : > { %v1350_v49 = vadd.f32 %v1815_v47, %v1349_v48 }
 0x68b   : > { %v1354_v50 = vadd.f32 %v1350_v49, %v1250_v33 }
 0x68d   : > { %v1356_v51 = vsel %vm746_vm1, %v1354_v50, 0.0 }
 0x68e   : > { %1357 = vadd.xlane.f32.xlu0 %v1356_v51 }
 0x690   : > { %v1351_v52 = vpop.f32.mrf.mxu1 }
 0x691   : > { %v1352_v53 = vadd.f32 %v1815_v47, %v1351_v52 }
 0x693   : > { %v1355_v6 = vadd.f32 %v1352_v53, %v1251_v34 }
 0x695   : > { %v1359_v54 = vsel %vm746_vm1, %v1355_v6, 0.0 }
 0x696   : > { %1360 = vadd.xlane.f32.xlu2 %v1359_v54 }
 0x701   : > { %v1358_v55 = vpop.xlane.xlu0 %1357 }
 0x702   : > { %v1362_v57 = vmul.f32 %v1358_v55, %v2433_v56 }
 0x704   : > { %v1364_v58 = vsub.f32 %v1354_v50, %v1362_v57 }
 0x706   : > { %v1366_v59 = vmul.f32 %v1364_v58, %v1364_v58 }
 0x708   : > { %v1368_v9 = vsel %vm746_vm1, %v1366_v59, 0.0 }
 0x709   : > { %v1361_v60 = vpop.xlane.xlu2 %1360  ;;  %1369 = vadd.xlane.f32.xlu1 %v1368_v9 }
 0x70a   : > { %v1363_v61 = vmul.f32 %v1361_v60, %v2433_v56 }
 0x70c   : > { %v1365_v62 = vsub.f32 %v1355_v6, %v1363_v61 }
 0x70e   : > { %v1367_v63 = vmul.f32 %v1365_v62, %v1365_v62 }
 0x710   : > { %v1371_v0 = vsel %vm746_vm1, %v1367_v63, 0.0 }
 0x711   : > { %1372 = vadd.xlane.f32.xlu0 %v1371_v0 }
 0x77c   : > { %v1370_v1 = vpop.xlane.xlu1 %1369 }
 0x77d   : > { %v1374_v2 = vmul.f32 %v1370_v1, %v2433_v56 }
 0x77f   : > { %v1376_v3 = vadd.f32 1e-05, %v1374_v2 }
 0x781   : > { %1840 = vrsqrt.f32 %v1376_v3  ;;  %vm1384_vm15 = vweird.f32 %v1376_v3 }
 0x784   : > { %v1373_v4 = vpop.xlane.xlu0 %1372 }
 0x785   : > { %v1375_v5 = vmul.f32 %v1373_v4, %v2433_v56 }
 0x787   : > { %v1841_v7 = vpop.eup %1840  ;;  %v1377_v8 = vadd.f32 1e-05, %v1375_v5 }
 0x788   : > { %v1379_v10 = vmul.f32 %v1841_v7, %v1376_v3  ;;  %vm1385_vm14 = vweird.f32 %v1841_v7 }
 0x789   : > { %1842 = vrsqrt.f32 %v1377_v8  ;;  %vm1386_vm0 = vmor %vm1384_vm15, %vm1385_vm14  ;;  %vm1394_vm6 = vweird.f32 %v1377_v8 }
 0x78a   : > { %v1380_v11 = vmul.f32 %v1841_v7, %v1379_v10 }
 0x78c   : > { %v1381_v12 = vmul.f32 0.5, %v1380_v11 }
 0x78e   : > { %v1382_v13 = vsub.f32 1.5, %v1381_v12 }
 0x78f   : > { %v1843_v14 = vpop.eup %1842 }
 0x790   : > { %v1383_v15 = vmul.f32 %v1841_v7, %v1382_v13  ;;  %v1389_v16 = vmul.f32 %v1843_v14, %v1377_v8  ;;  %vm1395_vm5 = vweird.f32 %v1843_v14 }
 0x791   : > { %vm1396_vm7 = vmor %vm1394_vm6, %vm1395_vm5 }
 0x792   : > { %v1387_v56 = vsel %vm1386_vm0, %v1841_v7, %v1383_v15  ;;  %v1390_v18 = vmul.f32 %v1843_v14, %v1389_v16 }
 0x793   : > { %v1398_v20 = vmul.f32 %v1387_v56, %v1364_v58 }
 0x794   : > { %v1391_v21 = vmul.f32 0.5, %v1390_v18 }
 0x795   : > { %v1405_v22 = vmul.f32 %v1816_v17, %v1398_v20 }
 0x796   : > { %v1392_v23 = vsub.f32 1.5, %v1391_v21 }
 0x797   : > { %v1412_v24 = vadd.f32 %v1817_v19, %v1405_v22 }
 0x798   : > { %v1393_v25 = vmul.f32 %v1843_v14, %v1392_v23 }
 0x799   : > { %1414 = vst.msk [vmem:[#allocation2] sm:$0xff] %vm746_vm1, %v1412_v24 }
 0x79a   : > { %v1397_v26 = vsel %vm1396_vm7, %v1843_v14, %v1393_v25 }
 0x79b   : > { %v1399_v28 = vmul.f32 %v1397_v26, %v1365_v62 }
 0x79d   : > { %v1406_v29 = vmul.f32 %v1816_v17, %v1399_v28  ;;  %1419 = sbr.rel (%p1666_p8) target bundleno = 1956 (0x7a4), region = 128 }
 0x79f   : > { %v1413_v30 = vadd.f32 %v1817_v19, %v1406_v29 }
 0x7a1   : > { %1415 = vst.msk [vmem:[#allocation2 + $0x8] sm:$0xff] %vm746_vm1, %v1413_v30 }
 0x7a2   : > { %1420 = vst.msk [vmem:[#allocation15] sm:$0xff] %vm746_vm1, %v1412_v24 }
 0x7a3   : > { %1421 = vst.msk [vmem:[#allocation15 + $0x8] sm:$0xff] %vm746_vm1, %v1413_v30 }
 0x7a4 PF: > { %s2556_s24 = sld [smem:[#allocation21_spill]]  ;;  %s2142_s23 = smov [#allocation15]  }
 0x7a5   : > { %s2558_s2 = sld [smem:[#allocation31_spill]]  ;;  %s1430_s8 = sshll.u32 %s2142_s23, 4  ;;  %s1431_s8 = int_to_ptr.vmem [resolvable:$true] %s1430_s8 }
 0x7a6   : > { %s2143_s15 = smov 128   ;;  %s2144_s16 = smov 8  }
 0x7aa   : > { %s2557_s20 = sadd.s32 4294967295, %s2556_s24  }
 0x7ab   : > { %p1759_p9 = scmp.eq.s32.totalorder %s2557_s20, 1  ;;  %s1432_s0 = sshll.u32 %s2558_s2, 4  ;;  %s1433_s0 = int_to_ptr.hbm [resolvable:$true] %s1432_s0 }
 0x7ad   : > { %1720 = dma.vmem_to_hbm [thread:$0]  (%p1759_p9), %s1431_s8, 256, %s1433_s0, [#allocation5], %s2143_s15, %s2143_s15, %s2144_s16  }
 0x7ae   : > { %2111 = dma.done.wait (%p1759_p9), [#allocation5], 256  }
 0x7af   : > { %2113 = vsyncadd (%p1759_p9), [#allocation5], 4294967040 }
 0x7b0 PF: > { %s2559_s27 = sld [smem:[#allocation21_spill]] }
 0x7b6   : > { %s33_s29 = sadd.s32 1, %s2559_s27   ;;  %s2560_s27 = smov %s2120_s28 }
 0x7b7   : > { %p30_p10 = scmp.ge.s32.totalorder %s33_s29, 4   ;;  %s2561_s28 = smov %s2563_s14 }
 0x7b9   :  { %32 = sbr.rel (!%p30_p10) target bundleno = 17 (0x11), region = 172 }
 0x7be   :  { %1449 = vsyncpa [#allocation4], 1 }
 0x7bf   :  { %1451 = vsyncpa [#allocation4 + $0x1], 1 }
 0x7c0   :  { %1452 = vsyncpa [#allocation7], 1 }
 0x7c1   :  { %1453 = vsyncpa [#allocation10], 1 }
 0x7c2   :  { %1454 = vsyncpa [#allocation13], 1 }
 0x7c3   :  { %1455 = vsyncpa [#allocation5], 1 }
 0x7c4   :  { %1457 = vsyncpa [#allocation5 + $0x1], 1 }

</bundles_post_ra>
